<compile_context>
chip_gen: v7x
topology: tpu7x:2x2x1
jax: 0.10.0
libtpu: 0.0.40
codegen_flags: <defaults>
</compile_context>

<pallas_src>
import math

import jax
import jax.numpy as jnp
from jax.experimental import pallas as pl
from jax.experimental.pallas import tpu as pltpu

# ---- small, module-consistent config -------------------------------------------
VOCAB = 64
N_LAYER = 2
N_HEAD = 2
N_EMB = 32
BLOCK_SIZE = 16
B, T = 2, 8
HEAD_DIM = N_EMB // N_HEAD
LN_EPS = 1e-5            # torch.nn.LayerNorm default
INV_SQRT2 = 0.7071067811865476
HEAD_PAD = 128           # lane-dense logits slab width (>= VOCAB)


# ---- in-kernel helpers -----------------------------------------------------------
def _layernorm(x, gamma, beta):
    mu = jnp.mean(x, axis=-1, keepdims=True)
    var = jnp.mean((x - mu) * (x - mu), axis=-1, keepdims=True)
    return (x - mu) * jax.lax.rsqrt(var + LN_EPS) * gamma + beta


# Abramowitz & Stegun 7.1.26 rational approximation of erf (|err| <= 1.5e-7):
# keeps PyTorch's exact (erf-based) GELU semantics using only basic VPU/EUP ops.
_ERF_P = 0.3275911
_ERF_A1, _ERF_A2, _ERF_A3, _ERF_A4, _ERF_A5 = (
    0.254829592, -0.284496736, 1.421413741, -1.453152027, 1.061405429)


def _erf_approx(x):
    ax = jnp.abs(x)
    t = 1.0 / (1.0 + _ERF_P * ax)
    poly = t * (_ERF_A1 + t * (_ERF_A2 + t * (_ERF_A3 + t * (_ERF_A4 + t * _ERF_A5))))
    y = 1.0 - poly * jnp.exp(-ax * ax)
    return jnp.where(x < 0.0, -y, y)


def _gelu_exact(x):
    return 0.5 * x * (1.0 + _erf_approx(x * INV_SQRT2))


def _softmax_rows(s):
    s = s - jnp.max(s, axis=-1, keepdims=True)
    p = jnp.exp(s)
    return p / jnp.sum(p, axis=-1, keepdims=True)     # exact reciprocal (review)


# ---- single fused Pallas kernel ---------------------------------------------------
def tiny_gpt_kernel(idx_ref,                                   # VMEM (B*T, 1) int32
                    wte_ref, pos_ref, bias_ref,                # emb / tiled wpe / attn bias
                    wqkv_ref, bqkv_ref, wo_ref, bo_ref,        # stacked per-layer attn
                    w1_ref, b1_ref, w2_ref, b2_ref,            # stacked per-layer MLP
                    g1_ref, be1_ref, g2_ref, be2_ref,          # stacked per-layer LN
                    gf_ref, bf_ref, wte_t_ref,                 # final LN + padded tied head
                    o_ref):                                    # (B*T, HEAD_PAD) out
    # --- embedding gather as one-hot MXU matmul: x = onehot(idx) @ wte + wpe_tiled --
    vocab_iota = jax.lax.broadcasted_iota(jnp.int32, (B * T, VOCAB), 1)
    one_hot = jnp.where(idx_ref[...] == vocab_iota, 1.0, 0.0)        # (B*T, VOCAB) f32
    x = jnp.dot(one_hot, wte_ref[...],
                preferred_element_type=jnp.float32) + pos_ref[...]   # (B*T, E)

    attn_bias = bias_ref[...]          # (B*T, B*T): 0 same-batch, -1e30 cross-batch

    for l in range(N_LAYER):                                   # static unrolled
        wqkv_l = wqkv_ref[l]
        bqkv_l = bqkv_ref[l]
        wo_l = wo_ref[l]

        # fused QKV projection (1/sqrt(head_dim) already folded into Q cols/bias)
        qkv = jnp.dot(x, wqkv_l, preferred_element_type=jnp.float32) + bqkv_l

        # accumulator starts as the (broadcast) output-proj bias: no zeros init
        attn = bo_ref[l]                                       # (1, E)
        for h in range(N_HEAD):
            lo = h * HEAD_DIM
            hi = lo + HEAD_DIM
            qh = qkv[:, lo:hi]
            kh = qkv[:, N_EMB + lo:N_EMB + hi]
            vh = qkv[:, 2 * N_EMB + lo:2 * N_EMB + hi]
            # scores over the full (B*T) block; cross-batch entries masked by bias
            s = jax.lax.dot_general(qh, kh, (((1,), (1,)), ((), ())),
                                    preferred_element_type=jnp.float32)
            p = _softmax_rows(s + attn_bias)
            hv = jnp.dot(p, vh, preferred_element_type=jnp.float32)   # (B*T, HD)
            # per-head slice of W_o rows == concat-then-project, no concatenate
            attn = attn + jnp.dot(hv, wo_l[lo:hi, :],
                                  preferred_element_type=jnp.float32)

        # residual + LN1
        x = _layernorm(x + attn, g1_ref[l], be1_ref[l])

        # feed-forward (exact gelu) + residual + LN2
        h1 = _gelu_exact(jnp.dot(x, w1_ref[l],
                                 preferred_element_type=jnp.float32) + b1_ref[l])
        ff = jnp.dot(h1, w2_ref[l], preferred_element_type=jnp.float32) + b2_ref[l]
        x = _layernorm(x + ff, g2_ref[l], be2_ref[l])

    # final LN + tied head, zero-padded to 128 lanes -> full unmasked store
    y = _layernorm(x, gf_ref[...], bf_ref[...])
    o_ref[...] = jnp.dot(y, wte_t_ref[...], preferred_element_type=jnp.float32)


# ---- wrapper ----------------------------------------------------------------------
def tiny_gpt_forward(idx, params):
    idx_col = idx.reshape(B * T, 1).astype(jnp.int32)
    args = (idx_col, params["wte"], params["pos"], params["attn_bias"],
            params["wqkv_t"], params["bqkv"], params["wo_t"], params["bo"],
            params["w1_t"], params["b1"], params["w2_t"], params["b2"],
            params["g1"], params["be1"], params["g2"], params["be2"],
            params["gf"], params["bf"], params["wte_t_pad"])
    vmem = pl.BlockSpec(memory_space=pltpu.MemorySpace.VMEM)
    logits_pad = pl.pallas_call(
        tiny_gpt_kernel,
        out_shape=jax.ShapeDtypeStruct((B * T, HEAD_PAD), jnp.float32),
        in_specs=[vmem] * len(args),
        out_specs=vmem,
    )(*args)
    return logits_pad[:, :VOCAB].reshape(B, T, VOCAB)


# ---- deterministic parameter init (PyTorch layouts) --------------------------------
def init_raw_params(key):
    std = 0.02

    def nrm(k, shape, s=std):
        return s * jax.random.normal(k, shape, jnp.float32)

    ks = jax.random.split(key, 4 + N_LAYER)
    raw = {
        "wte": nrm(ks[0], (VOCAB, N_EMB)),
        "wpe": nrm(ks[1], (BLOCK_SIZE, N_EMB)),
        "gf": 1.0 + nrm(ks[2], (N_EMB,), 0.1),
        "bf": nrm(ks[3], (N_EMB,), 0.1),
        "layers": [],
    }
    for i in range(N_LAYER):
        lk = jax.random.split(ks[4 + i], 12)
        raw["layers"].append({
            "wqkv": nrm(lk[0], (3 * N_EMB, N_EMB)),   # torch (out, in) layouts
            "bqkv": nrm(lk[1], (3 * N_EMB,), 0.1),
            "wo": nrm(lk[2], (N_EMB, N_EMB)),
            "bo": nrm(lk[3], (N_EMB,), 0.1),
            "w1": nrm(lk[4], (4 * N_EMB, N_EMB)),
            "b1": nrm(lk[5], (4 * N_EMB,), 0.1),
            "w2": nrm(lk[6], (N_EMB, 4 * N_EMB)),
            "b2": nrm(lk[7], (N_EMB,), 0.1),
            "g1": 1.0 + nrm(lk[8], (N_EMB,), 0.1),
            "be1": nrm(lk[9], (N_EMB,), 0.1),
            "g2": 1.0 + nrm(lk[10], (N_EMB,), 0.1),
            "be2": nrm(lk[11], (N_EMB,), 0.1),
        })
    return raw


def pack_params(raw):
    """Kernel-friendly packing: x@W layouts, scale folded into Q, stacked layers,
    pre-tiled positional slab, precomputed additive block-diagonal attention bias,
    tied head weight pre-transposed and zero-padded to 128 lanes."""
    scale = 1.0 / math.sqrt(HEAD_DIM)
    p = {
        "wte": raw["wte"],
        "wte_t_pad": jnp.zeros((N_EMB, HEAD_PAD), jnp.float32)
                        .at[:, :VOCAB].set(raw["wte"].T),
        "pos": jnp.tile(raw["wpe"][:T], (B, 1)),               # (B*T, E)
        "gf": raw["gf"].reshape(1, -1),
        "bf": raw["bf"].reshape(1, -1),
    }
    row_b = jnp.arange(B * T)[:, None] // T
    col_b = jnp.arange(B * T)[None, :] // T
    p["attn_bias"] = jnp.where(row_b == col_b, 0.0, -1e30).astype(jnp.float32)

    def stk(fn):
        return jnp.stack([fn(L) for L in raw["layers"]])

    p["wqkv_t"] = stk(lambda L: L["wqkv"].T.at[:, :N_EMB].multiply(scale))
    p["bqkv"] = stk(lambda L: L["bqkv"].reshape(1, -1).at[:, :N_EMB].multiply(scale))
    p["wo_t"] = stk(lambda L: L["wo"].T)
    p["bo"] = stk(lambda L: L["bo"].reshape(1, -1))
    p["w1_t"] = stk(lambda L: L["w1"].T)
    p["b1"] = stk(lambda L: L["b1"].reshape(1, -1))
    p["w2_t"] = stk(lambda L: L["w2"].T)
    p["b2"] = stk(lambda L: L["b2"].reshape(1, -1))
    for k in ("g1", "be1", "g2", "be2"):
        p[k] = stk(lambda L, k=k: L[k].reshape(1, -1))
    return p


# ---- pure-JAX reference (mirrors PyTorch semantics) --------------------------------
def _ref_layernorm(x, g, b):
    mu = x.mean(-1, keepdims=True)
    var = ((x - mu) ** 2).mean(-1, keepdims=True)
    return (x - mu) / jnp.sqrt(var + LN_EPS) * g + b


def tiny_gpt_reference(idx, raw):
    pos = jnp.arange(T)
    x = raw["wte"][idx] + raw["wpe"][pos][None]                      # (B, T, E)
    for L in raw["layers"]:
        qkv = x @ L["wqkv"].T + L["bqkv"]
        q, k, v = jnp.split(qkv, 3, axis=-1)
        q = q.reshape(B, T, N_HEAD, HEAD_DIM).transpose(0, 2, 1, 3)
        k = k.reshape(B, T, N_HEAD, HEAD_DIM).transpose(0, 2, 1, 3)
        v = v.reshape(B, T, N_HEAD, HEAD_DIM).transpose(0, 2, 1, 3)
        s = (q @ k.transpose(0, 1, 3, 2)) / jnp.float32(math.sqrt(HEAD_DIM))
        p = jax.nn.softmax(s, axis=-1)
        a = (p @ v).transpose(0, 2, 1, 3).reshape(B, T, N_EMB)
        a = a @ L["wo"].T + L["bo"]
        x = _ref_layernorm(x + a, L["g1"], L["be1"])
        f = jax.nn.gelu(x @ L["w1"].T + L["b1"], approximate=False) @ L["w2"].T + L["b2"]
        x = _ref_layernorm(x + f, L["g2"], L["be2"])
    y = _ref_layernorm(x, raw["gf"], raw["bf"])
    return y @ raw["wte"].T


if __name__ == "__main__":
    key = jax.random.PRNGKey(0)
    k_idx, k_par = jax.random.split(key)
    idx = jax.random.randint(k_idx, (B, T), 0, VOCAB, dtype=jnp.int32)

    raw = init_raw_params(k_par)
    params = pack_params(raw)

    logits = tiny_gpt_forward(idx, params)
    logits = jax.block_until_ready(logits)

    assert logits.shape == (B, T, VOCAB), logits.shape
    assert logits.dtype == jnp.float32
    assert bool(jnp.all(jnp.isfinite(logits)))

    # correctness check against a pure-JAX reference of the PyTorch module
    with jax.default_matmul_precision("highest"):
        ref = tiny_gpt_reference(idx, raw)
    assert bool(jnp.allclose(logits, ref, atol=2e-3, rtol=2e-3)), (
        float(jnp.max(jnp.abs(logits - ref))))

    print("KERNEL_OK")
</pallas_src>

<mosaic_0001>
module attributes {stable_mosaic.version = 11 : i64} {
  func.func @tiny_gpt_kernel(%arg0: memref<16x1xi32, #tpu.memory_space<vmem>>, %arg1: memref<64x32xf32, #tpu.memory_space<vmem>>, %arg2: memref<16x32xf32, #tpu.memory_space<vmem>>, %arg3: memref<16x16xf32, #tpu.memory_space<vmem>>, %arg4: memref<2x32x96xf32, #tpu.memory_space<vmem>>, %arg5: memref<2x1x96xf32, #tpu.memory_space<vmem>>, %arg6: memref<2x32x32xf32, #tpu.memory_space<vmem>>, %arg7: memref<2x1x32xf32, #tpu.memory_space<vmem>>, %arg8: memref<2x32x128xf32, #tpu.memory_space<vmem>>, %arg9: memref<2x1x128xf32, #tpu.memory_space<vmem>>, %arg10: memref<2x128x32xf32, #tpu.memory_space<vmem>>, %arg11: memref<2x1x32xf32, #tpu.memory_space<vmem>>, %arg12: memref<2x1x32xf32, #tpu.memory_space<vmem>>, %arg13: memref<2x1x32xf32, #tpu.memory_space<vmem>>, %arg14: memref<2x1x32xf32, #tpu.memory_space<vmem>>, %arg15: memref<2x1x32xf32, #tpu.memory_space<vmem>>, %arg16: memref<1x32xf32, #tpu.memory_space<vmem>>, %arg17: memref<1x32xf32, #tpu.memory_space<vmem>>, %arg18: memref<32x128xf32, #tpu.memory_space<vmem>>, %arg19: memref<16x128xf32, #tpu.memory_space<vmem>>) attributes {dimension_semantics = [], scalar_prefetch = 0 : i64, scratch_operands = 0 : i64, tpu.core_type = #tpu.core_type<tc>} {
    %0 = tpu.iota {dimensions = array<i32: 1>} : vector<16x64xi32>
    %c0 = arith.constant 0 : index
    %c0_0 = arith.constant 0 : index
    %1 = vector.load %arg0[%c0, %c0_0] : memref<16x1xi32, #tpu.memory_space<vmem>>, vector<16x1xi32>
    %2 = vector.broadcast %1 : vector<16x1xi32> to vector<16x64xi32>
    %3 = arith.cmpi eq, %2, %0 : vector<16x64xi32>
    %cst = arith.constant 1.000000e+00 : f32
    %cst_1 = arith.constant 0.000000e+00 : f32
    %4 = vector.broadcast %cst : f32 to vector<16x64xf32>
    %5 = vector.broadcast %cst_1 : f32 to vector<16x64xf32>
    %6 = arith.select %3, %4, %5 : vector<16x64xi1>, vector<16x64xf32>
    %c0_2 = arith.constant 0 : index
    %c0_3 = arith.constant 0 : index
    %7 = vector.load %arg1[%c0_2, %c0_3] : memref<64x32xf32, #tpu.memory_space<vmem>>, vector<64x32xf32>
    %cst_4 = arith.constant dense<0.000000e+00> : vector<16x32xf32>
    %8 = tpu.matmul %6, %7, %cst_4 {dimension_numbers = #tpu.dot_dimension_numbers<[1], [0], [0], [1], [0, 0, 1, 1], [], []>} : vector<16x64xf32>, vector<64x32xf32>, vector<16x32xf32> -> vector<16x32xf32>
    %c0_5 = arith.constant 0 : index
    %c0_6 = arith.constant 0 : index
    %9 = vector.load %arg2[%c0_5, %c0_6] : memref<16x32xf32, #tpu.memory_space<vmem>>, vector<16x32xf32>
    %10 = arith.addf %8, %9 : vector<16x32xf32>
    %c0_7 = arith.constant 0 : index
    %c0_8 = arith.constant 0 : index
    %11 = vector.load %arg3[%c0_7, %c0_8] : memref<16x16xf32, #tpu.memory_space<vmem>>, vector<16x16xf32>
    %c0_9 = arith.constant 0 : index
    %c0_10 = arith.constant 0 : index
    %c0_11 = arith.constant 0 : index
    %12 = vector.load %arg4[%c0_9, %c0_10, %c0_11] : memref<2x32x96xf32, #tpu.memory_space<vmem>>, vector<1x32x96xf32>
    %13 = vector.shape_cast %12 : vector<1x32x96xf32> to vector<32x96xf32>
    %c0_12 = arith.constant 0 : index
    %c0_13 = arith.constant 0 : index
    %c0_14 = arith.constant 0 : index
    %14 = vector.load %arg5[%c0_12, %c0_13, %c0_14] : memref<2x1x96xf32, #tpu.memory_space<vmem>>, vector<1x1x96xf32>
    %15 = vector.shape_cast %14 : vector<1x1x96xf32> to vector<1x96xf32>
    %c0_15 = arith.constant 0 : index
    %c0_16 = arith.constant 0 : index
    %c0_17 = arith.constant 0 : index
    %16 = vector.load %arg6[%c0_15, %c0_16, %c0_17] : memref<2x32x32xf32, #tpu.memory_space<vmem>>, vector<1x32x32xf32>
    %17 = vector.shape_cast %16 : vector<1x32x32xf32> to vector<32x32xf32>
    %cst_18 = arith.constant dense<0.000000e+00> : vector<16x96xf32>
    %18 = tpu.matmul %10, %13, %cst_18 {dimension_numbers = #tpu.dot_dimension_numbers<[1], [0], [0], [1], [0, 0, 1, 1], [], []>} : vector<16x32xf32>, vector<32x96xf32>, vector<16x96xf32> -> vector<16x96xf32>
    %19 = vector.broadcast %15 : vector<1x96xf32> to vector<16x96xf32>
    %20 = arith.addf %18, %19 : vector<16x96xf32>
    %c0_19 = arith.constant 0 : index
    %c0_20 = arith.constant 0 : index
    %c0_21 = arith.constant 0 : index
    %21 = vector.load %arg7[%c0_19, %c0_20, %c0_21] : memref<2x1x32xf32, #tpu.memory_space<vmem>>, vector<1x1x32xf32>
    %22 = vector.shape_cast %21 : vector<1x1x32xf32> to vector<1x32xf32>
    %23 = vector.extract_strided_slice %20 {offsets = [0, 0], sizes = [16, 16], strides = [1, 1]} : vector<16x96xf32> to vector<16x16xf32>
    %24 = vector.extract_strided_slice %20 {offsets = [0, 32], sizes = [16, 16], strides = [1, 1]} : vector<16x96xf32> to vector<16x16xf32>
    %25 = vector.extract_strided_slice %20 {offsets = [0, 64], sizes = [16, 16], strides = [1, 1]} : vector<16x96xf32> to vector<16x16xf32>
    %cst_22 = arith.constant dense<0.000000e+00> : vector<16x16xf32>
    %26 = tpu.matmul %23, %24, %cst_22 {dimension_numbers = #tpu.dot_dimension_numbers<[1], [1], [0], [0], [0, 0, 1, 0], [], []>} : vector<16x16xf32>, vector<16x16xf32>, vector<16x16xf32> -> vector<16x16xf32>
    %27 = arith.addf %26, %11 : vector<16x16xf32>
    %cst_23 = arith.constant dense<0xFF800000> : vector<16xf32>
    %28 = vector.multi_reduction <maximumf>, %27, %cst_23 [1] : vector<16x16xf32> to vector<16xf32>
    %29 = vector.shape_cast %28 : vector<16xf32> to vector<16x1xf32>
    %30 = vector.broadcast %29 : vector<16x1xf32> to vector<16x16xf32>
    %31 = arith.subf %27, %30 : vector<16x16xf32>
    %32 = math.exp %31 : vector<16x16xf32>
    %cst_24 = arith.constant dense<0.000000e+00> : vector<16xf32>
    %33 = vector.multi_reduction <add>, %32, %cst_24 [1] : vector<16x16xf32> to vector<16xf32>
    %34 = vector.shape_cast %33 : vector<16xf32> to vector<16x1xf32>
    %35 = vector.broadcast %34 : vector<16x1xf32> to vector<16x16xf32>
    %36 = arith.divf %32, %35 : vector<16x16xf32>
    %cst_25 = arith.constant dense<0.000000e+00> : vector<16x16xf32>
    %37 = tpu.matmul %36, %25, %cst_25 {dimension_numbers = #tpu.dot_dimension_numbers<[1], [0], [0], [1], [0, 0, 1, 1], [], []>} : vector<16x16xf32>, vector<16x16xf32>, vector<16x16xf32> -> vector<16x16xf32>
    %38 = vector.extract_strided_slice %17 {offsets = [0, 0], sizes = [16, 32], strides = [1, 1]} : vector<32x32xf32> to vector<16x32xf32>
    %cst_26 = arith.constant dense<0.000000e+00> : vector<16x32xf32>
    %39 = tpu.matmul %37, %38, %cst_26 {dimension_numbers = #tpu.dot_dimension_numbers<[1], [0], [0], [1], [0, 0, 1, 1], [], []>} : vector<16x16xf32>, vector<16x32xf32>, vector<16x32xf32> -> vector<16x32xf32>
    %40 = vector.broadcast %22 : vector<1x32xf32> to vector<16x32xf32>
    %41 = arith.addf %40, %39 : vector<16x32xf32>
    %42 = vector.extract_strided_slice %20 {offsets = [0, 16], sizes = [16, 16], strides = [1, 1]} : vector<16x96xf32> to vector<16x16xf32>
    %43 = vector.extract_strided_slice %20 {offsets = [0, 48], sizes = [16, 16], strides = [1, 1]} : vector<16x96xf32> to vector<16x16xf32>
    %44 = vector.extract_strided_slice %20 {offsets = [0, 80], sizes = [16, 16], strides = [1, 1]} : vector<16x96xf32> to vector<16x16xf32>
    %cst_27 = arith.constant dense<0.000000e+00> : vector<16x16xf32>
    %45 = tpu.matmul %42, %43, %cst_27 {dimension_numbers = #tpu.dot_dimension_numbers<[1], [1], [0], [0], [0, 0, 1, 0], [], []>} : vector<16x16xf32>, vector<16x16xf32>, vector<16x16xf32> -> vector<16x16xf32>
    %46 = arith.addf %45, %11 : vector<16x16xf32>
    %cst_28 = arith.constant dense<0xFF800000> : vector<16xf32>
    %47 = vector.multi_reduction <maximumf>, %46, %cst_28 [1] : vector<16x16xf32> to vector<16xf32>
    %48 = vector.shape_cast %47 : vector<16xf32> to vector<16x1xf32>
    %49 = vector.broadcast %48 : vector<16x1xf32> to vector<16x16xf32>
    %50 = arith.subf %46, %49 : vector<16x16xf32>
    %51 = math.exp %50 : vector<16x16xf32>
    %cst_29 = arith.constant dense<0.000000e+00> : vector<16xf32>
    %52 = vector.multi_reduction <add>, %51, %cst_29 [1] : vector<16x16xf32> to vector<16xf32>
    %53 = vector.shape_cast %52 : vector<16xf32> to vector<16x1xf32>
    %54 = vector.broadcast %53 : vector<16x1xf32> to vector<16x16xf32>
    %55 = arith.divf %51, %54 : vector<16x16xf32>
    %cst_30 = arith.constant dense<0.000000e+00> : vector<16x16xf32>
    %56 = tpu.matmul %55, %44, %cst_30 {dimension_numbers = #tpu.dot_dimension_numbers<[1], [0], [0], [1], [0, 0, 1, 1], [], []>} : vector<16x16xf32>, vector<16x16xf32>, vector<16x16xf32> -> vector<16x16xf32>
    %57 = vector.extract_strided_slice %17 {offsets = [16, 0], sizes = [16, 32], strides = [1, 1]} : vector<32x32xf32> to vector<16x32xf32>
    %cst_31 = arith.constant dense<0.000000e+00> : vector<16x32xf32>
    %58 = tpu.matmul %56, %57, %cst_31 {dimension_numbers = #tpu.dot_dimension_numbers<[1], [0], [0], [1], [0, 0, 1, 1], [], []>} : vector<16x16xf32>, vector<16x32xf32>, vector<16x32xf32> -> vector<16x32xf32>
    %59 = arith.addf %41, %58 : vector<16x32xf32>
    %60 = arith.addf %10, %59 : vector<16x32xf32>
    %c0_32 = arith.constant 0 : index
    %c0_33 = arith.constant 0 : index
    %c0_34 = arith.constant 0 : index
    %61 = vector.load %arg12[%c0_32, %c0_33, %c0_34] : memref<2x1x32xf32, #tpu.memory_space<vmem>>, vector<1x1x32xf32>
    %62 = vector.shape_cast %61 : vector<1x1x32xf32> to vector<1x32xf32>
    %c0_35 = arith.constant 0 : index
    %c0_36 = arith.constant 0 : index
    %c0_37 = arith.constant 0 : index
    %63 = vector.load %arg13[%c0_35, %c0_36, %c0_37] : memref<2x1x32xf32, #tpu.memory_space<vmem>>, vector<1x1x32xf32>
    %64 = vector.shape_cast %63 : vector<1x1x32xf32> to vector<1x32xf32>
    %cst_38 = arith.constant dense<0.000000e+00> : vector<16xf32>
    %65 = vector.multi_reduction <add>, %60, %cst_38 [1] : vector<16x32xf32> to vector<16xf32>
    %66 = vector.shape_cast %65 : vector<16xf32> to vector<16x1xf32>
    %cst_39 = arith.constant 3.200000e+01 : f32
    %67 = vector.broadcast %cst_39 : f32 to vector<16x1xf32>
    %68 = arith.divf %66, %67 : vector<16x1xf32>
    %69 = vector.broadcast %68 : vector<16x1xf32> to vector<16x32xf32>
    %70 = arith.subf %60, %69 : vector<16x32xf32>
    %71 = vector.broadcast %68 : vector<16x1xf32> to vector<16x32xf32>
    %72 = arith.subf %60, %71 : vector<16x32xf32>
    %73 = arith.mulf %70, %72 : vector<16x32xf32>
    %cst_40 = arith.constant dense<0.000000e+00> : vector<16xf32>
    %74 = vector.multi_reduction <add>, %73, %cst_40 [1] : vector<16x32xf32> to vector<16xf32>
    %75 = vector.shape_cast %74 : vector<16xf32> to vector<16x1xf32>
    %cst_41 = arith.constant 3.200000e+01 : f32
    %76 = vector.broadcast %cst_41 : f32 to vector<16x1xf32>
    %77 = arith.divf %75, %76 : vector<16x1xf32>
    %78 = vector.broadcast %68 : vector<16x1xf32> to vector<16x32xf32>
    %79 = arith.subf %60, %78 : vector<16x32xf32>
    %cst_42 = arith.constant 9.99999974E-6 : f32
    %80 = vector.broadcast %cst_42 : f32 to vector<16x1xf32>
    %81 = arith.addf %77, %80 : vector<16x1xf32>
    %82 = math.rsqrt %81 : vector<16x1xf32>
    %83 = vector.broadcast %82 : vector<16x1xf32> to vector<16x32xf32>
    %84 = arith.mulf %79, %83 : vector<16x32xf32>
    %85 = vector.broadcast %62 : vector<1x32xf32> to vector<16x32xf32>
    %86 = arith.mulf %84, %85 : vector<16x32xf32>
    %87 = vector.broadcast %64 : vector<1x32xf32> to vector<16x32xf32>
    %88 = arith.addf %86, %87 : vector<16x32xf32>
    %c0_43 = arith.constant 0 : index
    %c0_44 = arith.constant 0 : index
    %c0_45 = arith.constant 0 : index
    %89 = vector.load %arg8[%c0_43, %c0_44, %c0_45] : memref<2x32x128xf32, #tpu.memory_space<vmem>>, vector<1x32x128xf32>
    %90 = vector.shape_cast %89 : vector<1x32x128xf32> to vector<32x128xf32>
    %cst_46 = arith.constant dense<0.000000e+00> : vector<16x128xf32>
    %91 = tpu.matmul %88, %90, %cst_46 {dimension_numbers = #tpu.dot_dimension_numbers<[1], [0], [0], [1], [0, 0, 1, 1], [], []>} : vector<16x32xf32>, vector<32x128xf32>, vector<16x128xf32> -> vector<16x128xf32>
    %c0_47 = arith.constant 0 : index
    %c0_48 = arith.constant 0 : index
    %c0_49 = arith.constant 0 : index
    %92 = vector.load %arg9[%c0_47, %c0_48, %c0_49] : memref<2x1x128xf32, #tpu.memory_space<vmem>>, vector<1x1x128xf32>
    %93 = vector.shape_cast %92 : vector<1x1x128xf32> to vector<1x128xf32>
    %94 = vector.broadcast %93 : vector<1x128xf32> to vector<16x128xf32>
    %95 = arith.addf %91, %94 : vector<16x128xf32>
    %cst_50 = arith.constant 5.000000e-01 : f32
    %96 = vector.broadcast %cst_50 : f32 to vector<16x128xf32>
    %97 = arith.mulf %96, %95 : vector<16x128xf32>
    %cst_51 = arith.constant 0.707106769 : f32
    %98 = vector.broadcast %cst_51 : f32 to vector<16x128xf32>
    %99 = arith.mulf %95, %98 : vector<16x128xf32>
    %100 = math.absf %99 : vector<16x128xf32>
    %cst_52 = arith.constant 0.327591091 : f32
    %101 = vector.broadcast %cst_52 : f32 to vector<16x128xf32>
    %102 = arith.mulf %101, %100 : vector<16x128xf32>
    %cst_53 = arith.constant 1.000000e+00 : f32
    %103 = vector.broadcast %cst_53 : f32 to vector<16x128xf32>
    %104 = arith.addf %103, %102 : vector<16x128xf32>
    %cst_54 = arith.constant 1.000000e+00 : f32
    %105 = vector.broadcast %cst_54 : f32 to vector<16x128xf32>
    %106 = arith.divf %105, %104 : vector<16x128xf32>
    %cst_55 = arith.constant 1.06140542 : f32
    %107 = vector.broadcast %cst_55 : f32 to vector<16x128xf32>
    %108 = arith.mulf %106, %107 : vector<16x128xf32>
    %cst_56 = arith.constant -1.45315206 : f32
    %109 = vector.broadcast %cst_56 : f32 to vector<16x128xf32>
    %110 = arith.addf %109, %108 : vector<16x128xf32>
    %111 = arith.mulf %106, %110 : vector<16x128xf32>
    %cst_57 = arith.constant 1.42141378 : f32
    %112 = vector.broadcast %cst_57 : f32 to vector<16x128xf32>
    %113 = arith.addf %112, %111 : vector<16x128xf32>
    %114 = arith.mulf %106, %113 : vector<16x128xf32>
    %cst_58 = arith.constant -0.284496725 : f32
    %115 = vector.broadcast %cst_58 : f32 to vector<16x128xf32>
    %116 = arith.addf %115, %114 : vector<16x128xf32>
    %117 = arith.mulf %106, %116 : vector<16x128xf32>
    %cst_59 = arith.constant 0.254829586 : f32
    %118 = vector.broadcast %cst_59 : f32 to vector<16x128xf32>
    %119 = arith.addf %118, %117 : vector<16x128xf32>
    %120 = arith.mulf %106, %119 : vector<16x128xf32>
    %cst_60 = arith.constant 0.000000e+00 : f32
    %121 = vector.broadcast %cst_60 : f32 to vector<16x128xf32>
    %122 = arith.subf %121, %100 : vector<16x128xf32>
    %123 = arith.mulf %122, %100 : vector<16x128xf32>
    %124 = math.exp %123 : vector<16x128xf32>
    %125 = arith.mulf %120, %124 : vector<16x128xf32>
    %cst_61 = arith.constant 1.000000e+00 : f32
    %126 = vector.broadcast %cst_61 : f32 to vector<16x128xf32>
    %127 = arith.subf %126, %125 : vector<16x128xf32>
    %cst_62 = arith.constant 0.000000e+00 : f32
    %128 = vector.broadcast %cst_62 : f32 to vector<16x128xf32>
    %129 = arith.cmpf olt, %99, %128 : vector<16x128xf32>
    %cst_63 = arith.constant 0.000000e+00 : f32
    %130 = vector.broadcast %cst_63 : f32 to vector<16x128xf32>
    %131 = arith.subf %130, %127 : vector<16x128xf32>
    %132 = arith.select %129, %131, %127 : vector<16x128xi1>, vector<16x128xf32>
    %cst_64 = arith.constant 1.000000e+00 : f32
    %133 = vector.broadcast %cst_64 : f32 to vector<16x128xf32>
    %134 = arith.addf %133, %132 : vector<16x128xf32>
    %135 = arith.mulf %97, %134 : vector<16x128xf32>
    %c0_65 = arith.constant 0 : index
    %c0_66 = arith.constant 0 : index
    %c0_67 = arith.constant 0 : index
    %136 = vector.load %arg10[%c0_65, %c0_66, %c0_67] : memref<2x128x32xf32, #tpu.memory_space<vmem>>, vector<1x128x32xf32>
    %137 = vector.shape_cast %136 : vector<1x128x32xf32> to vector<128x32xf32>
    %cst_68 = arith.constant dense<0.000000e+00> : vector<16x32xf32>
    %138 = tpu.matmul %135, %137, %cst_68 {dimension_numbers = #tpu.dot_dimension_numbers<[1], [0], [0], [1], [0, 0, 1, 1], [], []>} : vector<16x128xf32>, vector<128x32xf32>, vector<16x32xf32> -> vector<16x32xf32>
    %c0_69 = arith.constant 0 : index
    %c0_70 = arith.constant 0 : index
    %c0_71 = arith.constant 0 : index
    %139 = vector.load %arg11[%c0_69, %c0_70, %c0_71] : memref<2x1x32xf32, #tpu.memory_space<vmem>>, vector<1x1x32xf32>
    %140 = vector.shape_cast %139 : vector<1x1x32xf32> to vector<1x32xf32>
    %141 = vector.broadcast %140 : vector<1x32xf32> to vector<16x32xf32>
    %142 = arith.addf %138, %141 : vector<16x32xf32>
    %143 = arith.addf %88, %142 : vector<16x32xf32>
    %c0_72 = arith.constant 0 : index
    %c0_73 = arith.constant 0 : index
    %c0_74 = arith.constant 0 : index
    %144 = vector.load %arg14[%c0_72, %c0_73, %c0_74] : memref<2x1x32xf32, #tpu.memory_space<vmem>>, vector<1x1x32xf32>
    %145 = vector.shape_cast %144 : vector<1x1x32xf32> to vector<1x32xf32>
    %c0_75 = arith.constant 0 : index
    %c0_76 = arith.constant 0 : index
    %c0_77 = arith.constant 0 : index
    %146 = vector.load %arg15[%c0_75, %c0_76, %c0_77] : memref<2x1x32xf32, #tpu.memory_space<vmem>>, vector<1x1x32xf32>
    %147 = vector.shape_cast %146 : vector<1x1x32xf32> to vector<1x32xf32>
    %cst_78 = arith.constant dense<0.000000e+00> : vector<16xf32>
    %148 = vector.multi_reduction <add>, %143, %cst_78 [1] : vector<16x32xf32> to vector<16xf32>
    %149 = vector.shape_cast %148 : vector<16xf32> to vector<16x1xf32>
    %cst_79 = arith.constant 3.200000e+01 : f32
    %150 = vector.broadcast %cst_79 : f32 to vector<16x1xf32>
    %151 = arith.divf %149, %150 : vector<16x1xf32>
    %152 = vector.broadcast %151 : vector<16x1xf32> to vector<16x32xf32>
    %153 = arith.subf %143, %152 : vector<16x32xf32>
    %154 = vector.broadcast %151 : vector<16x1xf32> to vector<16x32xf32>
    %155 = arith.subf %143, %154 : vector<16x32xf32>
    %156 = arith.mulf %153, %155 : vector<16x32xf32>
    %cst_80 = arith.constant dense<0.000000e+00> : vector<16xf32>
    %157 = vector.multi_reduction <add>, %156, %cst_80 [1] : vector<16x32xf32> to vector<16xf32>
    %158 = vector.shape_cast %157 : vector<16xf32> to vector<16x1xf32>
    %cst_81 = arith.constant 3.200000e+01 : f32
    %159 = vector.broadcast %cst_81 : f32 to vector<16x1xf32>
    %160 = arith.divf %158, %159 : vector<16x1xf32>
    %161 = vector.broadcast %151 : vector<16x1xf32> to vector<16x32xf32>
    %162 = arith.subf %143, %161 : vector<16x32xf32>
    %cst_82 = arith.constant 9.99999974E-6 : f32
    %163 = vector.broadcast %cst_82 : f32 to vector<16x1xf32>
    %164 = arith.addf %160, %163 : vector<16x1xf32>
    %165 = math.rsqrt %164 : vector<16x1xf32>
    %166 = vector.broadcast %165 : vector<16x1xf32> to vector<16x32xf32>
    %167 = arith.mulf %162, %166 : vector<16x32xf32>
    %168 = vector.broadcast %145 : vector<1x32xf32> to vector<16x32xf32>
    %169 = arith.mulf %167, %168 : vector<16x32xf32>
    %170 = vector.broadcast %147 : vector<1x32xf32> to vector<16x32xf32>
    %171 = arith.addf %169, %170 : vector<16x32xf32>
    %c1 = arith.constant 1 : index
    %c0_83 = arith.constant 0 : index
    %c0_84 = arith.constant 0 : index
    %172 = vector.load %arg4[%c1, %c0_83, %c0_84] : memref<2x32x96xf32, #tpu.memory_space<vmem>>, vector<1x32x96xf32>
    %173 = vector.shape_cast %172 : vector<1x32x96xf32> to vector<32x96xf32>
    %c1_85 = arith.constant 1 : index
    %c0_86 = arith.constant 0 : index
    %c0_87 = arith.constant 0 : index
    %174 = vector.load %arg5[%c1_85, %c0_86, %c0_87] : memref<2x1x96xf32, #tpu.memory_space<vmem>>, vector<1x1x96xf32>
    %175 = vector.shape_cast %174 : vector<1x1x96xf32> to vector<1x96xf32>
    %c1_88 = arith.constant 1 : index
    %c0_89 = arith.constant 0 : index
    %c0_90 = arith.constant 0 : index
    %176 = vector.load %arg6[%c1_88, %c0_89, %c0_90] : memref<2x32x32xf32, #tpu.memory_space<vmem>>, vector<1x32x32xf32>
    %177 = vector.shape_cast %176 : vector<1x32x32xf32> to vector<32x32xf32>
    %cst_91 = arith.constant dense<0.000000e+00> : vector<16x96xf32>
    %178 = tpu.matmul %171, %173, %cst_91 {dimension_numbers = #tpu.dot_dimension_numbers<[1], [0], [0], [1], [0, 0, 1, 1], [], []>} : vector<16x32xf32>, vector<32x96xf32>, vector<16x96xf32> -> vector<16x96xf32>
    %179 = vector.broadcast %175 : vector<1x96xf32> to vector<16x96xf32>
    %180 = arith.addf %178, %179 : vector<16x96xf32>
    %c1_92 = arith.constant 1 : index
    %c0_93 = arith.constant 0 : index
    %c0_94 = arith.constant 0 : index
    %181 = vector.load %arg7[%c1_92, %c0_93, %c0_94] : memref<2x1x32xf32, #tpu.memory_space<vmem>>, vector<1x1x32xf32>
    %182 = vector.shape_cast %181 : vector<1x1x32xf32> to vector<1x32xf32>
    %183 = vector.extract_strided_slice %180 {offsets = [0, 0], sizes = [16, 16], strides = [1, 1]} : vector<16x96xf32> to vector<16x16xf32>
    %184 = vector.extract_strided_slice %180 {offsets = [0, 32], sizes = [16, 16], strides = [1, 1]} : vector<16x96xf32> to vector<16x16xf32>
    %185 = vector.extract_strided_slice %180 {offsets = [0, 64], sizes = [16, 16], strides = [1, 1]} : vector<16x96xf32> to vector<16x16xf32>
    %cst_95 = arith.constant dense<0.000000e+00> : vector<16x16xf32>
    %186 = tpu.matmul %183, %184, %cst_95 {dimension_numbers = #tpu.dot_dimension_numbers<[1], [1], [0], [0], [0, 0, 1, 0], [], []>} : vector<16x16xf32>, vector<16x16xf32>, vector<16x16xf32> -> vector<16x16xf32>
    %187 = arith.addf %186, %11 : vector<16x16xf32>
    %cst_96 = arith.constant dense<0xFF800000> : vector<16xf32>
    %188 = vector.multi_reduction <maximumf>, %187, %cst_96 [1] : vector<16x16xf32> to vector<16xf32>
    %189 = vector.shape_cast %188 : vector<16xf32> to vector<16x1xf32>
    %190 = vector.broadcast %189 : vector<16x1xf32> to vector<16x16xf32>
    %191 = arith.subf %187, %190 : vector<16x16xf32>
    %192 = math.exp %191 : vector<16x16xf32>
    %cst_97 = arith.constant dense<0.000000e+00> : vector<16xf32>
    %193 = vector.multi_reduction <add>, %192, %cst_97 [1] : vector<16x16xf32> to vector<16xf32>
    %194 = vector.shape_cast %193 : vector<16xf32> to vector<16x1xf32>
    %195 = vector.broadcast %194 : vector<16x1xf32> to vector<16x16xf32>
    %196 = arith.divf %192, %195 : vector<16x16xf32>
    %cst_98 = arith.constant dense<0.000000e+00> : vector<16x16xf32>
    %197 = tpu.matmul %196, %185, %cst_98 {dimension_numbers = #tpu.dot_dimension_numbers<[1], [0], [0], [1], [0, 0, 1, 1], [], []>} : vector<16x16xf32>, vector<16x16xf32>, vector<16x16xf32> -> vector<16x16xf32>
    %198 = vector.extract_strided_slice %177 {offsets = [0, 0], sizes = [16, 32], strides = [1, 1]} : vector<32x32xf32> to vector<16x32xf32>
    %cst_99 = arith.constant dense<0.000000e+00> : vector<16x32xf32>
    %199 = tpu.matmul %197, %198, %cst_99 {dimension_numbers = #tpu.dot_dimension_numbers<[1], [0], [0], [1], [0, 0, 1, 1], [], []>} : vector<16x16xf32>, vector<16x32xf32>, vector<16x32xf32> -> vector<16x32xf32>
    %200 = vector.broadcast %182 : vector<1x32xf32> to vector<16x32xf32>
    %201 = arith.addf %200, %199 : vector<16x32xf32>
    %202 = vector.extract_strided_slice %180 {offsets = [0, 16], sizes = [16, 16], strides = [1, 1]} : vector<16x96xf32> to vector<16x16xf32>
    %203 = vector.extract_strided_slice %180 {offsets = [0, 48], sizes = [16, 16], strides = [1, 1]} : vector<16x96xf32> to vector<16x16xf32>
    %204 = vector.extract_strided_slice %180 {offsets = [0, 80], sizes = [16, 16], strides = [1, 1]} : vector<16x96xf32> to vector<16x16xf32>
    %cst_100 = arith.constant dense<0.000000e+00> : vector<16x16xf32>
    %205 = tpu.matmul %202, %203, %cst_100 {dimension_numbers = #tpu.dot_dimension_numbers<[1], [1], [0], [0], [0, 0, 1, 0], [], []>} : vector<16x16xf32>, vector<16x16xf32>, vector<16x16xf32> -> vector<16x16xf32>
    %206 = arith.addf %205, %11 : vector<16x16xf32>
    %cst_101 = arith.constant dense<0xFF800000> : vector<16xf32>
    %207 = vector.multi_reduction <maximumf>, %206, %cst_101 [1] : vector<16x16xf32> to vector<16xf32>
    %208 = vector.shape_cast %207 : vector<16xf32> to vector<16x1xf32>
    %209 = vector.broadcast %208 : vector<16x1xf32> to vector<16x16xf32>
    %210 = arith.subf %206, %209 : vector<16x16xf32>
    %211 = math.exp %210 : vector<16x16xf32>
    %cst_102 = arith.constant dense<0.000000e+00> : vector<16xf32>
    %212 = vector.multi_reduction <add>, %211, %cst_102 [1] : vector<16x16xf32> to vector<16xf32>
    %213 = vector.shape_cast %212 : vector<16xf32> to vector<16x1xf32>
    %214 = vector.broadcast %213 : vector<16x1xf32> to vector<16x16xf32>
    %215 = arith.divf %211, %214 : vector<16x16xf32>
    %cst_103 = arith.constant dense<0.000000e+00> : vector<16x16xf32>
    %216 = tpu.matmul %215, %204, %cst_103 {dimension_numbers = #tpu.dot_dimension_numbers<[1], [0], [0], [1], [0, 0, 1, 1], [], []>} : vector<16x16xf32>, vector<16x16xf32>, vector<16x16xf32> -> vector<16x16xf32>
    %217 = vector.extract_strided_slice %177 {offsets = [16, 0], sizes = [16, 32], strides = [1, 1]} : vector<32x32xf32> to vector<16x32xf32>
    %cst_104 = arith.constant dense<0.000000e+00> : vector<16x32xf32>
    %218 = tpu.matmul %216, %217, %cst_104 {dimension_numbers = #tpu.dot_dimension_numbers<[1], [0], [0], [1], [0, 0, 1, 1], [], []>} : vector<16x16xf32>, vector<16x32xf32>, vector<16x32xf32> -> vector<16x32xf32>
    %219 = arith.addf %201, %218 : vector<16x32xf32>
    %220 = arith.addf %171, %219 : vector<16x32xf32>
    %c1_105 = arith.constant 1 : index
    %c0_106 = arith.constant 0 : index
    %c0_107 = arith.constant 0 : index
    %221 = vector.load %arg12[%c1_105, %c0_106, %c0_107] : memref<2x1x32xf32, #tpu.memory_space<vmem>>, vector<1x1x32xf32>
    %222 = vector.shape_cast %221 : vector<1x1x32xf32> to vector<1x32xf32>
    %c1_108 = arith.constant 1 : index
    %c0_109 = arith.constant 0 : index
    %c0_110 = arith.constant 0 : index
    %223 = vector.load %arg13[%c1_108, %c0_109, %c0_110] : memref<2x1x32xf32, #tpu.memory_space<vmem>>, vector<1x1x32xf32>
    %224 = vector.shape_cast %223 : vector<1x1x32xf32> to vector<1x32xf32>
    %cst_111 = arith.constant dense<0.000000e+00> : vector<16xf32>
    %225 = vector.multi_reduction <add>, %220, %cst_111 [1] : vector<16x32xf32> to vector<16xf32>
    %226 = vector.shape_cast %225 : vector<16xf32> to vector<16x1xf32>
    %cst_112 = arith.constant 3.200000e+01 : f32
    %227 = vector.broadcast %cst_112 : f32 to vector<16x1xf32>
    %228 = arith.divf %226, %227 : vector<16x1xf32>
    %229 = vector.broadcast %228 : vector<16x1xf32> to vector<16x32xf32>
    %230 = arith.subf %220, %229 : vector<16x32xf32>
    %231 = vector.broadcast %228 : vector<16x1xf32> to vector<16x32xf32>
    %232 = arith.subf %220, %231 : vector<16x32xf32>
    %233 = arith.mulf %230, %232 : vector<16x32xf32>
    %cst_113 = arith.constant dense<0.000000e+00> : vector<16xf32>
    %234 = vector.multi_reduction <add>, %233, %cst_113 [1] : vector<16x32xf32> to vector<16xf32>
    %235 = vector.shape_cast %234 : vector<16xf32> to vector<16x1xf32>
    %cst_114 = arith.constant 3.200000e+01 : f32
    %236 = vector.broadcast %cst_114 : f32 to vector<16x1xf32>
    %237 = arith.divf %235, %236 : vector<16x1xf32>
    %238 = vector.broadcast %228 : vector<16x1xf32> to vector<16x32xf32>
    %239 = arith.subf %220, %238 : vector<16x32xf32>
    %cst_115 = arith.constant 9.99999974E-6 : f32
    %240 = vector.broadcast %cst_115 : f32 to vector<16x1xf32>
    %241 = arith.addf %237, %240 : vector<16x1xf32>
    %242 = math.rsqrt %241 : vector<16x1xf32>
    %243 = vector.broadcast %242 : vector<16x1xf32> to vector<16x32xf32>
    %244 = arith.mulf %239, %243 : vector<16x32xf32>
    %245 = vector.broadcast %222 : vector<1x32xf32> to vector<16x32xf32>
    %246 = arith.mulf %244, %245 : vector<16x32xf32>
    %247 = vector.broadcast %224 : vector<1x32xf32> to vector<16x32xf32>
    %248 = arith.addf %246, %247 : vector<16x32xf32>
    %c1_116 = arith.constant 1 : index
    %c0_117 = arith.constant 0 : index
    %c0_118 = arith.constant 0 : index
    %249 = vector.load %arg8[%c1_116, %c0_117, %c0_118] : memref<2x32x128xf32, #tpu.memory_space<vmem>>, vector<1x32x128xf32>
    %250 = vector.shape_cast %249 : vector<1x32x128xf32> to vector<32x128xf32>
    %cst_119 = arith.constant dense<0.000000e+00> : vector<16x128xf32>
    %251 = tpu.matmul %248, %250, %cst_119 {dimension_numbers = #tpu.dot_dimension_numbers<[1], [0], [0], [1], [0, 0, 1, 1], [], []>} : vector<16x32xf32>, vector<32x128xf32>, vector<16x128xf32> -> vector<16x128xf32>
    %c1_120 = arith.constant 1 : index
    %c0_121 = arith.constant 0 : index
    %c0_122 = arith.constant 0 : index
    %252 = vector.load %arg9[%c1_120, %c0_121, %c0_122] : memref<2x1x128xf32, #tpu.memory_space<vmem>>, vector<1x1x128xf32>
    %253 = vector.shape_cast %252 : vector<1x1x128xf32> to vector<1x128xf32>
    %254 = vector.broadcast %253 : vector<1x128xf32> to vector<16x128xf32>
    %255 = arith.addf %251, %254 : vector<16x128xf32>
    %cst_123 = arith.constant 5.000000e-01 : f32
    %256 = vector.broadcast %cst_123 : f32 to vector<16x128xf32>
    %257 = arith.mulf %256, %255 : vector<16x128xf32>
    %cst_124 = arith.constant 0.707106769 : f32
    %258 = vector.broadcast %cst_124 : f32 to vector<16x128xf32>
    %259 = arith.mulf %255, %258 : vector<16x128xf32>
    %260 = math.absf %259 : vector<16x128xf32>
    %cst_125 = arith.constant 0.327591091 : f32
    %261 = vector.broadcast %cst_125 : f32 to vector<16x128xf32>
    %262 = arith.mulf %261, %260 : vector<16x128xf32>
    %cst_126 = arith.constant 1.000000e+00 : f32
    %263 = vector.broadcast %cst_126 : f32 to vector<16x128xf32>
    %264 = arith.addf %263, %262 : vector<16x128xf32>
    %cst_127 = arith.constant 1.000000e+00 : f32
    %265 = vector.broadcast %cst_127 : f32 to vector<16x128xf32>
    %266 = arith.divf %265, %264 : vector<16x128xf32>
    %cst_128 = arith.constant 1.06140542 : f32
    %267 = vector.broadcast %cst_128 : f32 to vector<16x128xf32>
    %268 = arith.mulf %266, %267 : vector<16x128xf32>
    %cst_129 = arith.constant -1.45315206 : f32
    %269 = vector.broadcast %cst_129 : f32 to vector<16x128xf32>
    %270 = arith.addf %269, %268 : vector<16x128xf32>
    %271 = arith.mulf %266, %270 : vector<16x128xf32>
    %cst_130 = arith.constant 1.42141378 : f32
    %272 = vector.broadcast %cst_130 : f32 to vector<16x128xf32>
    %273 = arith.addf %272, %271 : vector<16x128xf32>
    %274 = arith.mulf %266, %273 : vector<16x128xf32>
    %cst_131 = arith.constant -0.284496725 : f32
    %275 = vector.broadcast %cst_131 : f32 to vector<16x128xf32>
    %276 = arith.addf %275, %274 : vector<16x128xf32>
    %277 = arith.mulf %266, %276 : vector<16x128xf32>
    %cst_132 = arith.constant 0.254829586 : f32
    %278 = vector.broadcast %cst_132 : f32 to vector<16x128xf32>
    %279 = arith.addf %278, %277 : vector<16x128xf32>
    %280 = arith.mulf %266, %279 : vector<16x128xf32>
    %cst_133 = arith.constant 0.000000e+00 : f32
    %281 = vector.broadcast %cst_133 : f32 to vector<16x128xf32>
    %282 = arith.subf %281, %260 : vector<16x128xf32>
    %283 = arith.mulf %282, %260 : vector<16x128xf32>
    %284 = math.exp %283 : vector<16x128xf32>
    %285 = arith.mulf %280, %284 : vector<16x128xf32>
    %cst_134 = arith.constant 1.000000e+00 : f32
    %286 = vector.broadcast %cst_134 : f32 to vector<16x128xf32>
    %287 = arith.subf %286, %285 : vector<16x128xf32>
    %cst_135 = arith.constant 0.000000e+00 : f32
    %288 = vector.broadcast %cst_135 : f32 to vector<16x128xf32>
    %289 = arith.cmpf olt, %259, %288 : vector<16x128xf32>
    %cst_136 = arith.constant 0.000000e+00 : f32
    %290 = vector.broadcast %cst_136 : f32 to vector<16x128xf32>
    %291 = arith.subf %290, %287 : vector<16x128xf32>
    %292 = arith.select %289, %291, %287 : vector<16x128xi1>, vector<16x128xf32>
    %cst_137 = arith.constant 1.000000e+00 : f32
    %293 = vector.broadcast %cst_137 : f32 to vector<16x128xf32>
    %294 = arith.addf %293, %292 : vector<16x128xf32>
    %295 = arith.mulf %257, %294 : vector<16x128xf32>
    %c1_138 = arith.constant 1 : index
    %c0_139 = arith.constant 0 : index
    %c0_140 = arith.constant 0 : index
    %296 = vector.load %arg10[%c1_138, %c0_139, %c0_140] : memref<2x128x32xf32, #tpu.memory_space<vmem>>, vector<1x128x32xf32>
    %297 = vector.shape_cast %296 : vector<1x128x32xf32> to vector<128x32xf32>
    %cst_141 = arith.constant dense<0.000000e+00> : vector<16x32xf32>
    %298 = tpu.matmul %295, %297, %cst_141 {dimension_numbers = #tpu.dot_dimension_numbers<[1], [0], [0], [1], [0, 0, 1, 1], [], []>} : vector<16x128xf32>, vector<128x32xf32>, vector<16x32xf32> -> vector<16x32xf32>
    %c1_142 = arith.constant 1 : index
    %c0_143 = arith.constant 0 : index
    %c0_144 = arith.constant 0 : index
    %299 = vector.load %arg11[%c1_142, %c0_143, %c0_144] : memref<2x1x32xf32, #tpu.memory_space<vmem>>, vector<1x1x32xf32>
    %300 = vector.shape_cast %299 : vector<1x1x32xf32> to vector<1x32xf32>
    %301 = vector.broadcast %300 : vector<1x32xf32> to vector<16x32xf32>
    %302 = arith.addf %298, %301 : vector<16x32xf32>
    %303 = arith.addf %248, %302 : vector<16x32xf32>
    %c1_145 = arith.constant 1 : index
    %c0_146 = arith.constant 0 : index
    %c0_147 = arith.constant 0 : index
    %304 = vector.load %arg14[%c1_145, %c0_146, %c0_147] : memref<2x1x32xf32, #tpu.memory_space<vmem>>, vector<1x1x32xf32>
    %305 = vector.shape_cast %304 : vector<1x1x32xf32> to vector<1x32xf32>
    %c1_148 = arith.constant 1 : index
    %c0_149 = arith.constant 0 : index
    %c0_150 = arith.constant 0 : index
    %306 = vector.load %arg15[%c1_148, %c0_149, %c0_150] : memref<2x1x32xf32, #tpu.memory_space<vmem>>, vector<1x1x32xf32>
    %307 = vector.shape_cast %306 : vector<1x1x32xf32> to vector<1x32xf32>
    %cst_151 = arith.constant dense<0.000000e+00> : vector<16xf32>
    %308 = vector.multi_reduction <add>, %303, %cst_151 [1] : vector<16x32xf32> to vector<16xf32>
    %309 = vector.shape_cast %308 : vector<16xf32> to vector<16x1xf32>
    %cst_152 = arith.constant 3.200000e+01 : f32
    %310 = vector.broadcast %cst_152 : f32 to vector<16x1xf32>
    %311 = arith.divf %309, %310 : vector<16x1xf32>
    %312 = vector.broadcast %311 : vector<16x1xf32> to vector<16x32xf32>
    %313 = arith.subf %303, %312 : vector<16x32xf32>
    %314 = vector.broadcast %311 : vector<16x1xf32> to vector<16x32xf32>
    %315 = arith.subf %303, %314 : vector<16x32xf32>
    %316 = arith.mulf %313, %315 : vector<16x32xf32>
    %cst_153 = arith.constant dense<0.000000e+00> : vector<16xf32>
    %317 = vector.multi_reduction <add>, %316, %cst_153 [1] : vector<16x32xf32> to vector<16xf32>
    %318 = vector.shape_cast %317 : vector<16xf32> to vector<16x1xf32>
    %cst_154 = arith.constant 3.200000e+01 : f32
    %319 = vector.broadcast %cst_154 : f32 to vector<16x1xf32>
    %320 = arith.divf %318, %319 : vector<16x1xf32>
    %321 = vector.broadcast %311 : vector<16x1xf32> to vector<16x32xf32>
    %322 = arith.subf %303, %321 : vector<16x32xf32>
    %cst_155 = arith.constant 9.99999974E-6 : f32
    %323 = vector.broadcast %cst_155 : f32 to vector<16x1xf32>
    %324 = arith.addf %320, %323 : vector<16x1xf32>
    %325 = math.rsqrt %324 : vector<16x1xf32>
    %326 = vector.broadcast %325 : vector<16x1xf32> to vector<16x32xf32>
    %327 = arith.mulf %322, %326 : vector<16x32xf32>
    %328 = vector.broadcast %305 : vector<1x32xf32> to vector<16x32xf32>
    %329 = arith.mulf %327, %328 : vector<16x32xf32>
    %330 = vector.broadcast %307 : vector<1x32xf32> to vector<16x32xf32>
    %331 = arith.addf %329, %330 : vector<16x32xf32>
    %c0_156 = arith.constant 0 : index
    %c0_157 = arith.constant 0 : index
    %332 = vector.load %arg16[%c0_156, %c0_157] : memref<1x32xf32, #tpu.memory_space<vmem>>, vector<1x32xf32>
    %c0_158 = arith.constant 0 : index
    %c0_159 = arith.constant 0 : index
    %333 = vector.load %arg17[%c0_158, %c0_159] : memref<1x32xf32, #tpu.memory_space<vmem>>, vector<1x32xf32>
    %cst_160 = arith.constant dense<0.000000e+00> : vector<16xf32>
    %334 = vector.multi_reduction <add>, %331, %cst_160 [1] : vector<16x32xf32> to vector<16xf32>
    %335 = vector.shape_cast %334 : vector<16xf32> to vector<16x1xf32>
    %cst_161 = arith.constant 3.200000e+01 : f32
    %336 = vector.broadcast %cst_161 : f32 to vector<16x1xf32>
    %337 = arith.divf %335, %336 : vector<16x1xf32>
    %338 = vector.broadcast %337 : vector<16x1xf32> to vector<16x32xf32>
    %339 = arith.subf %331, %338 : vector<16x32xf32>
    %340 = vector.broadcast %337 : vector<16x1xf32> to vector<16x32xf32>
    %341 = arith.subf %331, %340 : vector<16x32xf32>
    %342 = arith.mulf %339, %341 : vector<16x32xf32>
    %cst_162 = arith.constant dense<0.000000e+00> : vector<16xf32>
    %343 = vector.multi_reduction <add>, %342, %cst_162 [1] : vector<16x32xf32> to vector<16xf32>
    %344 = vector.shape_cast %343 : vector<16xf32> to vector<16x1xf32>
    %cst_163 = arith.constant 3.200000e+01 : f32
    %345 = vector.broadcast %cst_163 : f32 to vector<16x1xf32>
    %346 = arith.divf %344, %345 : vector<16x1xf32>
    %347 = vector.broadcast %337 : vector<16x1xf32> to vector<16x32xf32>
    %348 = arith.subf %331, %347 : vector<16x32xf32>
    %cst_164 = arith.constant 9.99999974E-6 : f32
    %349 = vector.broadcast %cst_164 : f32 to vector<16x1xf32>
    %350 = arith.addf %346, %349 : vector<16x1xf32>
    %351 = math.rsqrt %350 : vector<16x1xf32>
    %352 = vector.broadcast %351 : vector<16x1xf32> to vector<16x32xf32>
    %353 = arith.mulf %348, %352 : vector<16x32xf32>
    %354 = vector.broadcast %332 : vector<1x32xf32> to vector<16x32xf32>
    %355 = arith.mulf %353, %354 : vector<16x32xf32>
    %356 = vector.broadcast %333 : vector<1x32xf32> to vector<16x32xf32>
    %357 = arith.addf %355, %356 : vector<16x32xf32>
    %c0_165 = arith.constant 0 : index
    %c0_166 = arith.constant 0 : index
    %358 = vector.load %arg18[%c0_165, %c0_166] : memref<32x128xf32, #tpu.memory_space<vmem>>, vector<32x128xf32>
    %cst_167 = arith.constant dense<0.000000e+00> : vector<16x128xf32>
    %359 = tpu.matmul %357, %358, %cst_167 {dimension_numbers = #tpu.dot_dimension_numbers<[1], [0], [0], [1], [0, 0, 1, 1], [], []>} : vector<16x32xf32>, vector<32x128xf32>, vector<16x128xf32> -> vector<16x128xf32>
    %c0_168 = arith.constant 0 : index
    %c0_169 = arith.constant 0 : index
    %360 = vector.load %arg19[%c0_168, %c0_169] : memref<16x128xf32, #tpu.memory_space<vmem>>, vector<16x128xf32>
    tpu.vector_store %arg19[%c0_168, %c0_169], %359 {strides = array<i32>} : memref<16x128xf32, #tpu.memory_space<vmem>>, vector<16x128xf32>,
    return
  }
}

</mosaic_0001>

<bundles_post_ra>
// kernel: tpu_custom_call.1
= control target key start
LH: loop header
LB: loop body
LE: loop exit
PB: predicated region body
PF: predicated region fallthrough
CT: control target
= control target key end

     0   :  { %s3674_s0 = inlined_call_operand.vmem [shape: s32[16,1], index: 0, kind: input, shape index: {}]   ;;  %s3675_s1 = inlined_call_operand.vmem [shape: f32[64,32], index: 1, kind: input, shape index: {}]   ;;  %s3676_s2 = inlined_call_operand.vmem [shape: f32[16,32], index: 2, kind: input, shape index: {}]   ;;  %s3677_s3 = inlined_call_operand.vmem [shape: f32[16,16], index: 3, kind: input, shape index: {}]   ;;  %s3678_s4 = inlined_call_operand.vmem [shape: f32[2,32,96], index: 4, kind: input, shape index: {}]   ;;  %s3679_s5 = inlined_call_operand.vmem [shape: f32[2,1,96], index: 5, kind: input, shape index: {}]   ;;  %s3680_s6 = inlined_call_operand.vmem [shape: f32[2,32,32], index: 6, kind: input, shape index: {}]   ;;  %s3681_s7 = inlined_call_operand.vmem [shape: f32[2,1,32], index: 7, kind: input, shape index: {}]   ;;  %s3682_s8 = inlined_call_operand.vmem [shape: f32[2,32,128], index: 8, kind: input, shape index: {}]   ;;  %s3683_s9 = inlined_call_operand.vmem [shape: f32[2,1,128], index: 9, kind: input, shape index: {}]   ;;  %s3684_s10 = inlined_call_operand.vmem [shape: f32[2,128,32], index: 10, kind: input, shape index: {}]   ;;  %s3685_s11 = inlined_call_operand.vmem [shape: f32[2,1,32], index: 11, kind: input, shape index: {}]   ;;  %s3686_s12 = inlined_call_operand.vmem [shape: f32[2,1,32], index: 12, kind: input, shape index: {}]   ;;  %s3687_s13 = inlined_call_operand.vmem [shape: f32[2,1,32], index: 13, kind: input, shape index: {}]   ;;  %s3688_s14 = inlined_call_operand.vmem [shape: f32[2,1,32], index: 14, kind: input, shape index: {}]   ;;  %s3689_s15 = inlined_call_operand.vmem [shape: f32[2,1,32], index: 15, kind: input, shape index: {}]   ;;  %s3690_s16 = inlined_call_operand.vmem [shape: f32[1,32], index: 16, kind: input, shape index: {}]   ;;  %s3691_s17 = inlined_call_operand.vmem [shape: f32[1,32], index: 17, kind: input, shape index: {}]   ;;  %s3692_s18 = inlined_call_operand.vmem [shape: f32[32,128], index: 18, kind: input, shape index: {}]   ;;  %s3693_s19 = inlined_call_operand.hbm [shape: f32[16,128], index: 19, kind: output, shape index: {}]  }
   0x1   :  { %3699 = sst [smem:[#allocation5_spill]] %s3674_s0 }
   0x2   :  { %3700 = sst [smem:[#allocation6_spill]] %s3675_s1 }
   0x3   :  { %3701 = sst [smem:[#allocation7_spill]] %s3676_s2 }
   0x4   :  { %3702 = sst [smem:[#allocation8_spill]] %s3677_s3 }
   0x5   :  { %3703 = sst [smem:[#allocation9_spill]] %s3688_s14 }
   0x6   :  { %s3704_s20 = sld [smem:[#allocation5_spill]]  ;;  %s3705_s14 = sld [smem:[#allocation6_spill]]  ;;  %v3116_v2 = vmov 0  }
   0x7   :  { %2983 = vset.pattern.permute.xlu0 %v3116_v2 }
   0xc   :  { %v65_v0 = vld [vmem:[%s3704_s20] sm:$0xff]  ;;  %v78_v3 = vld [vmem:[%s3705_s14 + $0x8] sm:$0xff]  ;;  %v79_v4 = vld [vmem:[%s3705_s14 + $0x10] sm:$0xff] }
   0xd   :  { %v77_v1 = vld [vmem:[%s3705_s14] sm:$0xff]  ;;  %v80_v5 = vld [vmem:[%s3705_s14 + $0x18] sm:$0xff]  ;;  %68 = vperm.xlu0 %2983, %v65_v0   ;;  %v66_v6 = vld [vmem:[%s3704_s20 + $0x8] sm:$0xff] }
   0xe   :  { %v2789_v7 = vpack.c.bf16 %v78_v3, %v77_v1  ;;  %v2793_v8 = vpack.c.bf16 %v80_v5, %v79_v4  ;;  %v81_v9 = vld [vmem:[%s3705_s14 + $0x20] sm:$0xff]  ;;  %v82_v10 = vld [vmem:[%s3705_s14 + $0x28] sm:$0xff] }
   0xf   :  { %24 = vsyncpa [#allocation3], 0  ;;  %v2797_v11 = vpack.c.bf16 %v82_v10, %v81_v9  ;;  %v83_v12 = vld [vmem:[%s3705_s14 + $0x30] sm:$0xff]  ;;  %v84_v13 = vld [vmem:[%s3705_s14 + $0x38] sm:$0xff]  ;;  %v63_v18 = vlaneseq  ;;  %vm87_vm0 = vcmask 523264   ;;  %v3117_v21 = vmov 0.0  }
  0x10   :  { %2790 = vmatprep.subr.bf16.mxu1 %v2789_v7  ;;  %v2801_v14 = vpack.c.bf16 %v84_v13, %v83_v12  ;;  %v171_v15 = vld [vmem:[%s3678_s4] sm:$0xff]  ;;  %v172_v16 = vld [vmem:[%s3678_s4 + $0x8] sm:$0xff]  ;;  %v173_v25 = vld [vmem:[%s3678_s4 + $0x10] sm:$0xff]  ;;  %s3706_s0 = sld [smem:[#allocation7_spill]]  ;;  %vm186_vm3 = vcmask 261120   ;;  %vm275_vm4 = vcmask 130048  }
  0x11   :  { %2792 = vmatpush3.bf16.msra.mxu1 %v2789_v7  ;;  %71 = vperm.xlu0 %2983, %v66_v6   ;;  %v2805_v17 = vpack.c.bf16 %v172_v16, %v171_v15  ;;  %v64_v19 = vand.u32 127, %v63_v18  ;;  %v174_v26 = vld [vmem:[%s3678_s4 + $0x18] sm:$0xff]  ;;  %v2341_v34 = vld [vmem:[%s3679_s5] ss:$0 sm:$0xff]  ;;  %s3118_s22 = smov 96   ;;  %vm3292_vm5 = vmpackc.low %vm275_vm4, %vm275_vm4  ;;  %s3709_s24 = sld [smem:[#allocation8_spill]] }
  0x12   :  { %2794 = vmatprep.subr.bf16.mxu1 %v2793_v8  ;;  %v2809_v27 = vpack.c.bf16 %v174_v26, %v173_v25  ;;  %s3119_s3 = smov 80   ;;  %s3120_s26 = smov 112   ;;  %v176_v2 = vld [vmem:[%s3680_s6] sm:$0xff]  ;;  %v177_v3 = vld [vmem:[%s3680_s6 + $0x8] sm:$0xff] }
  0x13   :  { %s3121_s27 = smov 64   ;;  %v2823_v7 = vpack.c.bf16 %v177_v3, %v176_v2  ;;  %s3122_s21 = smov 48  }
  0x15   :  { %2796 = vmatpush3.bf16.msra.mxu1 %v2793_v8 }
  0x16   :  { %2798 = vmatprep.subr.bf16.mxu1 %v2797_v11  ;;  %v85_v28 = vld [vmem:[%s3706_s0] sm:$0xff]  ;;  %v86_v29 = vld [vmem:[%s3706_s0 + $0x8] sm:$0xff]  ;;  %s3710_s0 = sld [smem:[#allocation9_spill]] }
  0x17   :  { %v3304_v45 = vld [vmem:[%s3709_s24 + $0x8] sm:$0xff]  ;;  %v3309_v46 = vld [vmem:[%s3709_s24] sm:$0xff] }
  0x19   :  { %2800 = vmatpush3.bf16.msra.mxu1 %v2797_v11 }
  0x1a   :  { %2802 = vmatprep.subr.bf16.mxu1 %v2801_v14 }
  0x1d   :  { %2804 = vmatpush3.bf16.msra.mxu1 %v2801_v14 }
  0x1e   :  { %2806 = vmatprep.subr.bf16.mxu1 %v2805_v17 }
  0x8c   :  { %v69_v20 = vpop.permute.xlu0 %68 }
  0x8d   :  { %vm73_vm1 = vcmp.eq.s32.totalorder %v69_v20, %v64_v19 }
  0x8e   :  { %v75_v22 = vsel %vm73_vm1, 1.0, %v3117_v21 }
  0x8f   :  { %2577 = vmatprep.mubr.msk.f32.mxu1 %vm87_vm0, %v75_v22 }
  0x90   :  { %v72_v23 = vpop.permute.xlu0 %71 }
  0x91   :  { %vm74_vm2 = vcmp.eq.s32.totalorder %v72_v23, %v64_v19 }
  0x92   :  { %v76_v24 = vsel %vm74_vm2, 1.0, %v3117_v21 }
  0x93   :  { %2578 = vmatmul.mubr.msk.f32.vlgmr.msra.gmra.mrb[0].mxu1 %vm87_vm0, %v76_v24 }
  0x94   :  { %2808 = vmatpush3.bf16.msra.mxu1 %v2805_v17 }
  0x95   :  { %2810 = vmatprep.subr.bf16.mxu1 %v2809_v27 }
  0x98   :  { %2812 = vmatpush3.bf16.msra.mxu1 %v2809_v27 }
 0x166   :  { %v2579_v30 = vpop.f32.mrb[0].mxu1 }
 0x167   :  { %v160_v31 = vpop.f32.mrb[1].mxu1  ;;  %v3276_v33 = vadd.f32 %v2579_v30, %v86_v29 }
 0x168   :  { %v3274_v32 = vadd.f32 %v160_v31, %v85_v28 }
 0x16a   :  { %2588 = vmatprep.mubr.msk.f32.mxu1 %vm186_vm3, %v3274_v32 }
 0x16b   :  { %2589 = vmatmul.mubr.msk.f32.vlgmr.msra.gmra.mrb[2].mxu1 %vm186_vm3, %v3276_v33 }
 0x23e   :  { %v2590_v35 = vpop.f32.mrb[2].mxu1 }
 0x23f   :  { %v265_v36 = vadd.f32 %v2590_v35, %v2341_v34  ;;  %v259_v37 = vpop.f32.mrb[3].mxu1 }
 0x240   :  { %v260_v38 = vadd.f32 %v2341_v34, %v259_v37 }
 0x242   :  { %2595 = vmatprep.mubr.msk.f32.mxu1 %vm275_vm4, %v260_v38  ;;  %v3286_v39 = vpack.i.bf16 %v265_v36, %v260_v38 }
 0x244   :  { %2985 = vrot.lane.b32.xlu1 %v3286_v39, %s3118_s22 }
 0x2b6   :  { %v2986_v40 = vpop.permute.xlu1 %2985 }
 0x2b7   :  { %v2988_v41 = vunpack.i.h.bf16 %v2986_v40  ;;  %v2987_v42 = vunpack.i.l.bf16 %v2986_v40 }
 0x2b9   :  { %v2813_v44 = vpack.c.bf16 %v2988_v41, %v2987_v42 }
 0x2bb   :  { %2815 = vmatprep.subr.msk.bf16.mxu1 %vm3292_vm5, %v2813_v44 }
 0x2bc   :  { %2818 = vmatpush3.bf16.xpose.msk.msra.mxu1 %vm3292_vm5, %v2813_v44 }
 0x2c3   :  { %2596 = vmatmul.mubr.msk.f32.vlgmr.msra.gmra.mrb[4].mxu1 %vm275_vm4, %v265_v36 }
 0x396   :  { %v2597_v47 = vpop.f32.mrb[4].mxu1 }
 0x397   :  { %v356_v48 = vadd.f32 %v2597_v47, %v3304_v45  ;;  %v350_v49 = vpop.f32.mrb[5].mxu1  ;;  %v178_v47 = vld [vmem:[%s3680_s6 + $0x10] sm:$0xff] }
 0x398   :  { %v351_v50 = vadd.f32 %v350_v49, %v3309_v46 }
 0x399   :  { %v362_v51 = vsel %vm275_vm4, %v356_v48, -inf }
 0x39a   :  { %363 = vmax.xlane.f32.xlu0 %v362_v51  ;;  %v359_v52 = vsel %vm275_vm4, %v351_v50, -inf }
 0x39b   :  { %360 = vmax.xlane.f32.xlu1 %v359_v52 }
 0x427   :  { %v364_v53 = vpop.xlane.xlu0 %363 }
 0x428   :  { %v366_v54 = vsub.f32 %v356_v48, %v364_v53  ;;  %v361_v55 = vpop.xlane.xlu1 %360  ;;  %v179_v48 = vld [vmem:[%s3680_s6 + $0x18] sm:$0xff] }
 0x429   :  { %v365_v56 = vsub.f32 %v351_v50, %v361_v55  ;;  %v2837_v52 = vpack.c.bf16 %v179_v48, %v178_v47  ;;  %v1037_v47 = vld [vmem:[%s3684_s10 + $0x20] sm:$0xff]  ;;  %v1038_v48 = vld [vmem:[%s3684_s10 + $0x28] sm:$0xff] }
 0x42a   :  { %v369_v57 = vmul.f32 1.442695, %v366_v54 }
 0x42b   :  { %v367_v58 = vmul.f32 1.442695, %v365_v56 }
 0x42c   :  { %3024 = vpow2.f32 %v369_v57 }
 0x42d   :  { %3026 = vpow2.f32 %v367_v58  ;;  %v2352_v58 = vld [vmem:[%s3681_s7] ss:$0 sm:$0xff] }
 0x436   :  { %v3025_v59 = vpop.eup %3024 }
 0x437   :  { %v3027_v60 = vpop.eup %3026  ;;  %v374_v61 = vsel %vm275_vm4, %v3025_v59, 0.0 }
 0x438   :  { %375 = vadd.xlane.f32.xlu1 %v374_v61  ;;  %v371_v62 = vsel %vm275_vm4, %v3027_v60, 0.0 }
 0x439   :  { %372 = vadd.xlane.f32.xlu0 %v371_v62 }
 0x449   :  { %2995 = vrot.lane.b32.xlu1 %v3286_v39, %s3119_s3 }
 0x44d   :  { %557 = vrot.lane.b32.xlu1 %v260_v38, %s3120_s26 }
 0x44f   :  { %2990 = vrot.lane.b32.xlu0 %v3286_v39, %s3121_s27 }
 0x453   :  { %559 = vrot.lane.b32.xlu0 %v265_v36, %s3120_s26 }
 0x4c5   :  { %v376_v63 = vpop.xlane.xlu1 %375 }
 0x4c6   :  { %3028 = vrcp.f32 %v376_v63  ;;  %v373_v0 = vpop.xlane.xlu0 %372 }
 0x4c7   :  { %3030 = vrcp.f32 %v373_v0 }
 0x4c9   :  { %v2996_v8 = vpop.permute.xlu1 %2995 }
 0x4ca   :  { %v2991_v1 = vpop.permute.xlu0 %2990  ;;  %v2998_v11 = vunpack.i.h.bf16 %v2996_v8  ;;  %v2997_v12 = vunpack.i.l.bf16 %v2996_v8 }
 0x4cb   :  { %v2993_v4 = vunpack.i.h.bf16 %v2991_v1  ;;  %v2992_v5 = vunpack.i.l.bf16 %v2991_v1 }
 0x4cc   :  { %v2827_v15 = vpack.c.bf16 %v2998_v11, %v2997_v12 }
 0x4cd   :  { %v2819_v6 = vpack.c.bf16 %v2993_v4, %v2992_v5  ;;  %v558_v18 = vpop.permute.xlu1 %557 }
 0x4ce   :  { %v560_v19 = vpop.permute.xlu0 %559 }
 0x4cf   :  { %2820 = vmatprep.subr.bf16.mxu0 %v2819_v6 }
 0x4d0   :  { %v3029_v9 = vpop.eup %3028  ;;  %2822 = vmatpush3.bf16.msra.mxu0 %v2819_v6 }
 0x4d1   :  { %v3031_v10 = vpop.eup %3030  ;;  %2824 = vmatprep.subr.bf16.mxu0 %v2823_v7  ;;  %v380_v14 = vmul.f32 %v3029_v9, %v3025_v59 }
 0x4d2   :  { %v378_v13 = vmul.f32 %v3031_v10, %v3027_v60 }
 0x4d4   :  { %2602 = vmatprep.mubr.msk.f32.mxu0 %vm275_vm4, %v378_v13 }
 0x4d5   :  { %2603 = vmatmul.mubr.msk.f32.vlgmr.msra.gmra.mrb[0].mxu0 %vm275_vm4, %v380_v14  ;;  %v888_v14 = vld [vmem:[%s3682_s8 + $0x8] sm:$0xff] }
 0x4d6   :  { %2826 = vmatpush3.bf16.msra.mxu0 %v2823_v7 }
 0x4d7   :  { %2829 = vmatprep.subr.msk.bf16.mxu0 %vm3292_vm5, %v2827_v15 }
 0x5a8   :  { %v2604_v16 = vpop.f32.mrb[0].mxu0 }
 0x5a9   :  { %v459_v17 = vpop.f32.mrb[1].mxu0 }
 0x5aa   :  { %2609 = vmatprep.mubr.msk.f32.mxu0 %vm275_vm4, %v459_v17  ;;  %v890_v17 = vld [vmem:[%s3682_s8 + $0x18] sm:$0xff] }
 0x5ab   :  { %2610 = vmatmul.mubr.msk.f32.vlgmr.msra.gmra.mrb[2].mxu0 %vm275_vm4, %v2604_v16  ;;  %v889_v16 = vld [vmem:[%s3682_s8 + $0x10] sm:$0xff] }
 0x5ac   :  { %2832 = vmatpush3.bf16.xpose.msk.msra.mxu0 %vm3292_vm5, %v2827_v15  ;;  %2616 = vmatprep.mubr.msk.f32.mxu0 %vm275_vm4, %v558_v18  ;;  %v2845_v18 = vpack.c.bf16 %v890_v17, %v889_v16 }
 0x5b3   :  { %2617 = vmatmul.mubr.msk.f32.vlgmr.msra.gmra.mrb[4].mxu0 %vm275_vm4, %v560_v19 }
 0x67e   :  { %v2611_v20 = vpop.f32.mrb[2].mxu0 }
 0x67f   :  { %v540_v21 = vpop.f32.mrb[3].mxu0  ;;  %v556_v59 = vadd.f32 %v2611_v20, %v2352_v58 }
 0x680   :  { %v555_v60 = vadd.f32 %v2352_v58, %v540_v21  ;;  %v1045_v58 = vld [vmem:[%s3684_s10 + $0x60] sm:$0xff] }
 0x686   :  { %v2618_v22 = vpop.f32.mrb[4].mxu0 }
 0x687   :  { %v645_v23 = vadd.f32 %v2618_v22, %v3304_v45  ;;  %v639_v24 = vpop.f32.mrb[5].mxu0 }
 0x688   :  { %v640_v25 = vadd.f32 %v639_v24, %v3309_v46 }
 0x689   :  { %v651_v26 = vsel %vm275_vm4, %v645_v23, -inf }
 0x68a   :  { %652 = vmax.xlane.f32.xlu0 %v651_v26  ;;  %v648_v27 = vsel %vm275_vm4, %v640_v25, -inf  ;;  %v2361_v26 = vld [vmem:[%s3686_s12] ss:$0 sm:$0xff] }
 0x68b   :  { %649 = vmax.xlane.f32.xlu1 %v648_v27 }
 0x717   :  { %v653_v28 = vpop.xlane.xlu0 %652 }
 0x718   :  { %v655_v29 = vsub.f32 %v645_v23, %v653_v28  ;;  %v650_v30 = vpop.xlane.xlu1 %649  ;;  %v2362_v28 = vld [vmem:[%s3687_s13] ss:$0 sm:$0xff] }
 0x719   :  { %v654_v31 = vsub.f32 %v640_v25, %v650_v30 }
 0x71a   :  { %v658_v34 = vmul.f32 1.442695, %v655_v29 }
 0x71b   :  { %v656_v35 = vmul.f32 1.442695, %v654_v31 }
 0x71c   :  { %3032 = vpow2.f32 %v658_v34 }
 0x71d   :  { %3034 = vpow2.f32 %v656_v35 }
 0x726   :  { %v3033_v36 = vpop.eup %3032 }
 0x727   :  { %v3035_v37 = vpop.eup %3034  ;;  %v663_v38 = vsel %vm275_vm4, %v3033_v36, 0.0 }
 0x728   :  { %664 = vadd.xlane.f32.xlu1 %v663_v38  ;;  %v660_v40 = vsel %vm275_vm4, %v3035_v37, 0.0  ;;  %v1034_v38 = vld [vmem:[%s3684_s10 + $0x8] sm:$0xff] }
 0x729   :  { %661 = vadd.xlane.f32.xlu0 %v660_v40 }
 0x73f   :  { %3000 = vrot.lane.b32.xlu0 %v3286_v39, %s3122_s21 }
 0x7b5   :  { %v665_v41 = vpop.xlane.xlu1 %664 }
 0x7b6   :  { %3036 = vrcp.f32 %v665_v41  ;;  %v662_v42 = vpop.xlane.xlu0 %661  ;;  %v1035_v41 = vld [vmem:[%s3684_s10 + $0x10] sm:$0xff] }
 0x7b7   :  { %3038 = vrcp.f32 %v662_v42  ;;  %v1036_v42 = vld [vmem:[%s3684_s10 + $0x18] sm:$0xff] }
 0x7ba   :  { %v3001_v44 = vpop.permute.xlu0 %3000 }
 0x7bb   :  { %v3003_v49 = vunpack.i.h.bf16 %v3001_v44  ;;  %v3002_v50 = vunpack.i.l.bf16 %v3001_v44  ;;  %v2853_v44 = vpack.c.bf16 %v1036_v42, %v1035_v41 }
 0x7bd   :  { %v2833_v51 = vpack.c.bf16 %v3003_v49, %v3002_v50  ;;  %v2857_v49 = vpack.c.bf16 %v1038_v48, %v1037_v47  ;;  %v1039_v50 = vld [vmem:[%s3684_s10 + $0x30] sm:$0xff] }
 0x7bf   :  { %2834 = vmatprep.subr.bf16.mxu1 %v2833_v51 }
 0x7c0   :  { %v3037_v53 = vpop.eup %3036  ;;  %2836 = vmatpush3.bf16.msra.mxu1 %v2833_v51  ;;  %v1040_v51 = vld [vmem:[%s3684_s10 + $0x38] sm:$0xff] }
 0x7c1   :  { %v3039_v39 = vpop.eup %3038  ;;  %2838 = vmatprep.subr.bf16.mxu1 %v2837_v52  ;;  %v669_v55 = vmul.f32 %v3037_v53, %v3033_v36  ;;  %v1041_v53 = vld [vmem:[%s3684_s10 + $0x40] sm:$0xff] }
 0x7c2   :  { %v667_v54 = vmul.f32 %v3039_v39, %v3035_v37  ;;  %v1033_v37 = vld [vmem:[%s3684_s10] sm:$0xff]  ;;  %v1042_v39 = vld [vmem:[%s3684_s10 + $0x48] sm:$0xff] }
 0x7c3   :  { %v2849_v40 = vpack.c.bf16 %v1034_v38, %v1033_v37 }
 0x7c4   :  { %2623 = vmatprep.mubr.msk.f32.mxu1 %vm275_vm4, %v667_v54  ;;  %v2865_v54 = vpack.c.bf16 %v1042_v39, %v1041_v53 }
 0x7c5   :  { %2624 = vmatmul.mubr.msk.f32.vlgmr.msra.gmra.mrb[6].mxu1 %vm275_vm4, %v669_v55  ;;  %v1043_v55 = vld [vmem:[%s3684_s10 + $0x50] sm:$0xff] }
 0x7c6   :  { %2840 = vmatpush3.bf16.msra.mxu1 %v2837_v52  ;;  %v2861_v52 = vpack.c.bf16 %v1040_v51, %v1039_v50 }
 0x7c7   :  { %2850 = vmatprep.subr.bf16.mxu1 %v2849_v40 }
 0x898   :  { %v2625_v56 = vpop.f32.mrb[6].mxu1 }
 0x899   :  { %v748_v57 = vpop.f32.mrb[7].mxu1 }
 0x89a   :  { %2630 = vmatprep.mubr.msk.f32.mxu1 %vm275_vm4, %v748_v57 }
 0x89b   :  { %2631 = vmatmul.mubr.msk.f32.vlgmr.msra.gmra.mrb[8].mxu1 %vm275_vm4, %v2625_v56  ;;  %v1044_v56 = vld [vmem:[%s3684_s10 + $0x58] sm:$0xff] }
 0x89c   :  { %2852 = vmatpush3.bf16.msra.mxu1 %v2849_v40  ;;  %v2869_v57 = vpack.c.bf16 %v1044_v56, %v1043_v55 }
 0x89d   :  { %2854 = vmatprep.subr.bf16.mxu1 %v2853_v44 }
 0x8a0   :  { %2856 = vmatpush3.bf16.msra.mxu1 %v2853_v44 }
 0x8a1   :  { %2858 = vmatprep.subr.bf16.mxu1 %v2857_v49 }
 0x8a4   :  { %2860 = vmatpush3.bf16.msra.mxu1 %v2857_v49 }
 0x8a5   :  { %2862 = vmatprep.subr.bf16.mxu1 %v2861_v52 }
 0x8a8   :  { %2864 = vmatpush3.bf16.msra.mxu1 %v2861_v52 }
 0x8a9   :  { %2866 = vmatprep.subr.bf16.mxu1 %v2865_v54 }
 0x8ac   :  { %2868 = vmatpush3.bf16.msra.mxu1 %v2865_v54 }
 0x8ad   :  { %2870 = vmatprep.subr.bf16.mxu1 %v2869_v57 }
 0x8b0   :  { %2872 = vmatpush3.bf16.msra.mxu1 %v2869_v57 }
 0x96e   :  { %v2632_v61 = vpop.f32.mrb[8].mxu1 }
 0x96f   :  { %v839_v62 = vadd.f32 %v2632_v61, %v556_v59  ;;  %v829_v63 = vpop.f32.mrb[9].mxu1  ;;  %v1046_v59 = vld [vmem:[%s3684_s10 + $0x68] sm:$0xff]  ;;  %v1047_v61 = vld [vmem:[%s3684_s10 + $0x70] sm:$0xff] }
 0x970   :  { %v838_v0 = vadd.f32 %v829_v63, %v555_v60  ;;  %v2873_v60 = vpack.c.bf16 %v1046_v59, %v1045_v58 }
 0x971   :  { %v841_v3 = vadd.f32 %v839_v62, %v3276_v33  ;;  %v887_v33 = vld [vmem:[%s3682_s8] sm:$0xff]  ;;  %v1048_v62 = vld [vmem:[%s3684_s10 + $0x78] sm:$0xff] }
 0x972   :  { %v840_v1 = vadd.f32 %v838_v0, %v3274_v32  ;;  %v2841_v15 = vpack.c.bf16 %v888_v14, %v887_v33  ;;  %2874 = vmatprep.subr.bf16.mxu1 %v2873_v60  ;;  %v2877_v63 = vpack.c.bf16 %v1048_v62, %v1047_v61  ;;  %v2363_v0 = vld [vmem:[%s3683_s9] ss:$0 sm:$0xff] }
 0x973   :  { %v847_v4 = vsel %vm186_vm3, %v841_v3, 0.0  ;;  %2876 = vmatpush3.bf16.msra.mxu1 %v2873_v60  ;;  %v2366_v60 = vld [vmem:[%s3685_s11] ss:$0 sm:$0xff] }
 0x974   :  { %v844_v2 = vsel %vm186_vm3, %v840_v1, 0.0  ;;  %2842 = vmatprep.subr.bf16.mxu0 %v2841_v15  ;;  %2878 = vmatprep.subr.bf16.mxu1 %v2877_v63 }
 0x975   :  { %845 = vadd.xlane.f32.xlu1 %v844_v2  ;;  %2844 = vmatpush3.bf16.msra.mxu0 %v2841_v15 }
 0x976   :  { %2846 = vmatprep.subr.bf16.mxu0 %v2845_v18 }
 0x977   :  { %2880 = vmatpush3.bf16.msra.mxu1 %v2877_v63 }
 0x979   :  { %848 = vadd.xlane.f32.xlu1 %v847_v4  ;;  %2848 = vmatpush3.bf16.msra.mxu0 %v2845_v18 }
 0xa02   :  { %v846_v5 = vpop.xlane.xlu1 %845 }
 0xa03   :  { %v851_v6 = vmul.f32 0.03125, %v846_v5 }
 0xa05   :  { %v853_v7 = vsub.f32 %v840_v1, %v851_v6 }
 0xa06   :  { %v849_v8 = vpop.xlane.xlu1 %848 }
 0xa07   :  { %v852_v9 = vmul.f32 0.03125, %v849_v8  ;;  %v855_v10 = vmul.f32 %v853_v7, %v853_v7 }
 0xa09   :  { %v854_v11 = vsub.f32 %v841_v3, %v852_v9  ;;  %v857_v12 = vsel %vm186_vm3, %v855_v10, 0.0 }
 0xa0a   :  { %858 = vadd.xlane.f32.xlu1 %v857_v12 }
 0xa0b   :  { %v856_v13 = vmul.f32 %v854_v11, %v854_v11 }
 0xa0d   :  { %v860_v32 = vsel %vm186_vm3, %v856_v13, 0.0 }
 0xa0e   :  { %861 = vadd.xlane.f32.xlu1 %v860_v32 }
 0xa97   :  { %v859_v19 = vpop.xlane.xlu1 %858 }
 0xa98   :  { %v863_v20 = vmul.f32 0.03125, %v859_v19 }
 0xa9a   :  { %v865_v21 = vadd.f32 1e-05, %v863_v20 }
 0xa9b   :  { %v862_v22 = vpop.xlane.xlu1 %861 }
 0xa9c   :  { %3040 = vrsqrt.f32 %v865_v21  ;;  %v864_v23 = vmul.f32 0.03125, %v862_v22 }
 0xa9e   :  { %v866_v24 = vadd.f32 1e-05, %v864_v23 }
 0xaa0   :  { %3042 = vrsqrt.f32 %v866_v24 }
 0xaa6   :  { %v3041_v25 = vpop.eup %3040 }
 0xaa7   :  { %v869_v27 = vmul.f32 %v3041_v25, %v853_v7 }
 0xaa9   :  { %v877_v29 = vmul.f32 %v2361_v26, %v869_v27 }
 0xaaa   :  { %v3043_v30 = vpop.eup %3042 }
 0xaab   :  { %v870_v31 = vmul.f32 %v3043_v30, %v854_v11  ;;  %v3384_v34 = vadd.f32 %v2362_v28, %v877_v29 }
 0xaad   :  { %v878_v35 = vmul.f32 %v2361_v26, %v870_v31  ;;  %2641 = vmatprep.mubr.msk.f32.mxu0 %vm186_vm3, %v3384_v34 }
 0xaaf   :  { %v3388_v36 = vadd.f32 %v2362_v28, %v878_v35 }
 0xab1   :  { %2642 = vmatmul.mubr.msk.f32.vlgmr.msra.gmra.mrb[6].mxu0 %vm186_vm3, %v3388_v36 }
 0xb84   :  { %v2643_v1 = vpop.f32.mrb[6].mxu0 }
 0xb85   :  { %v976_v2 = vadd.f32 %v2643_v1, %v2363_v0  ;;  %v970_v3 = vpop.f32.mrb[7].mxu0 }
 0xb86   :  { %v971_v4 = vadd.f32 %v2363_v0, %v970_v3 }
 0xb87   :  { %v982_v5 = vmul.f32 0.70710677, %v976_v2  ;;  %v980_v57 = vmul.f32 0.5, %v976_v2 }
 0xb88   :  { %v981_v6 = vmul.f32 0.70710677, %v971_v4  ;;  %v979_v55 = vmul.f32 0.5, %v971_v4 }
 0xb89   :  { %v984_v7 = vand.u32 2147483647, %v982_v5  ;;  %vm1024_vm6 = vcmp.lt.f32.partialorder %v982_v5, 0.0 }
 0xb8a   :  { %v983_v8 = vand.u32 2147483647, %v981_v6  ;;  %vm1023_vm7 = vcmp.lt.f32.partialorder %v981_v6, 0.0 }
 0xb8b   :  { %v986_v9 = vmul.f32 0.3275911, %v984_v7  ;;  %v1012_v13 = vsub.f32 0.0, %v984_v7 }
 0xb8c   :  { %v985_v10 = vmul.f32 0.3275911, %v983_v8  ;;  %v1011_v32 = vsub.f32 0.0, %v983_v8 }
 0xb8d   :  { %v988_v11 = vadd.f32 1.0, %v986_v9  ;;  %v1014_v14 = vmul.f32 %v1012_v13, %v984_v7 }
 0xb8e   :  { %v987_v12 = vadd.f32 1.0, %v985_v10  ;;  %v1013_v17 = vmul.f32 %v1011_v32, %v983_v8  ;;  %v2370_v32 = vld [vmem:[%s3678_s4 + $0x28] sm:$0xff] }
 0xb8f   :  { %3044 = vrcp.f32 %v988_v11  ;;  %v1017_v20 = vmul.f32 1.442695, %v1014_v14  ;;  %v2371_v14 = vld [vmem:[%s3678_s4 + $0x30] sm:$0xff] }
 0xb90   :  { %3046 = vrcp.f32 %v987_v12  ;;  %v1015_v23 = vmul.f32 1.442695, %v1013_v17 }
 0xb91   :  { %3048 = vpow2.f32 %v1017_v20 }
 0xb92   :  { %3050 = vpow2.f32 %v1015_v23 }
 0xb99   :  { %v3045_v33 = vpop.eup %3044 }
 0xb9a   :  { %v3047_v15 = vpop.eup %3046  ;;  %v994_v16 = vmul.f32 1.0614054, %v3045_v33 }
 0xb9b   :  { %v993_v18 = vmul.f32 1.0614054, %v3047_v15  ;;  %v3049_v41 = vpop.eup %3048 }
 0xb9c   :  { %v996_v19 = vadd.f32 -1.4531521, %v994_v16  ;;  %v3051_v44 = vpop.eup %3050 }
 0xb9d   :  { %v995_v21 = vadd.f32 -1.4531521, %v993_v18 }
 0xb9e   :  { %v998_v22 = vmul.f32 %v3045_v33, %v996_v19 }
 0xb9f   :  { %v997_v24 = vmul.f32 %v3047_v15, %v995_v21 }
 0xba0   :  { %v1000_v25 = vadd.f32 1.4214138, %v998_v22 }
 0xba1   :  { %v999_v26 = vadd.f32 1.4214138, %v997_v24  ;;  %v2367_v24 = vld [vmem:[%s3710_s0] ss:$0 sm:$0xff] }
 0xba2   :  { %v1002_v27 = vmul.f32 %v3045_v33, %v1000_v25 }
 0xba3   :  { %v1001_v28 = vmul.f32 %v3047_v15, %v999_v26  ;;  %v2368_v26 = vld [vmem:[%s3689_s15] ss:$0 sm:$0xff] }
 0xba4   :  { %v1004_v29 = vadd.f32 -0.28449672, %v1002_v27 }
 0xba5   :  { %v1003_v30 = vadd.f32 -0.28449672, %v1001_v28 }
 0xba6   :  { %v1006_v31 = vmul.f32 %v3045_v33, %v1004_v29 }
 0xba7   :  { %v1005_v35 = vmul.f32 %v3047_v15, %v1003_v30 }
 0xba8   :  { %v1008_v37 = vadd.f32 0.2548296, %v1006_v31 }
 0xba9   :  { %v1007_v38 = vadd.f32 0.2548296, %v1005_v35 }
 0xbaa   :  { %v1010_v40 = vmul.f32 %v3045_v33, %v1008_v37  ;;  %v2378_v37 = vld [vmem:[%s3679_s5 + $0x1] ss:$0 sm:$0xff] }
 0xbab   :  { %v1009_v42 = vmul.f32 %v3047_v15, %v1007_v38  ;;  %v2372_v15 = vld [vmem:[%s3678_s4 + $0x38] sm:$0xff] }
 0xbac   :  { %v1020_v47 = vmul.f32 %v3049_v41, %v1010_v40  ;;  %v2885_v16 = vpack.c.bf16 %v2372_v15, %v2371_v14 }
 0xbad   :  { %v1019_v48 = vmul.f32 %v3051_v44, %v1009_v42 }
 0xbae   :  { %v1022_v49 = vsub.f32 1.0, %v1020_v47 }
 0xbaf   :  { %v1021_v50 = vsub.f32 1.0, %v1019_v48 }
 0xbb0   :  { %v1026_v51 = vsub.f32 0.0, %v1022_v49 }
 0xbb1   :  { %v1025_v52 = vsub.f32 0.0, %v1021_v50 }
 0xbb2   :  { %v1028_v53 = vsel %vm1024_vm6, %v1026_v51, %v1022_v49 }
 0xbb3   :  { %v1030_v39 = vadd.f32 1.0, %v1028_v53  ;;  %v1027_v54 = vsel %vm1023_vm7, %v1025_v52, %v1021_v50 }
 0xbb4   :  { %v1029_v56 = vadd.f32 1.0, %v1027_v54 }
 0xbb5   :  { %v1032_v59 = vmul.f32 %v1030_v39, %v980_v57 }
 0xbb6   :  { %v1031_v58 = vmul.f32 %v1029_v56, %v979_v55 }
 0xbb8   :  { %2676 = vmatprep.mubr.f32.mxu1 %v1031_v58 }
 0xbb9   :  { %2677 = vmatmul.mubr.f32.vlgmr.msra.gmra.mrb[10].mxu1 %v1032_v59 }
 0xc8c   :  { %v2678_v61 = vpop.f32.mrb[10].mxu1 }
 0xc8d   :  { %v1122_v62 = vpop.f32.mrb[11].mxu1  ;;  %v1128_v63 = vadd.f32 %v2678_v61, %v2366_v60 }
 0xc8e   :  { %v1123_v0 = vadd.f32 %v2366_v60, %v1122_v62 }
 0xc8f   :  { %v1132_v4 = vadd.f32 %v1128_v63, %v3388_v36  ;;  %v2369_v36 = vld [vmem:[%s3678_s4 + $0x20] sm:$0xff] }
 0xc90   :  { %v1131_v1 = vadd.f32 %v1123_v0, %v3384_v34  ;;  %v2881_v33 = vpack.c.bf16 %v2370_v32, %v2369_v36 }
 0xc91   :  { %v1138_v2 = vsel %vm186_vm3, %v1132_v4, 0.0 }
 0xc92   :  { %v1135_v3 = vsel %vm186_vm3, %v1131_v1, 0.0  ;;  %2882 = vmatprep.subr.bf16.mxu0 %v2881_v33 }
 0xc93   :  { %1136 = vadd.xlane.f32.xlu1 %v1135_v3  ;;  %2884 = vmatpush3.bf16.msra.mxu0 %v2881_v33 }
 0xc94   :  { %2886 = vmatprep.subr.bf16.mxu0 %v2885_v16 }
 0xc97   :  { %1139 = vadd.xlane.f32.xlu1 %v1138_v2  ;;  %2888 = vmatpush3.bf16.msra.mxu0 %v2885_v16 }
 0xd20   :  { %v1137_v5 = vpop.xlane.xlu1 %1136 }
 0xd21   :  { %v1141_v6 = vmul.f32 0.03125, %v1137_v5  ;;  %v2374_v5 = vld [vmem:[%s3680_s6 + $0x20] sm:$0xff] }
 0xd23   :  { %v1143_v7 = vsub.f32 %v1131_v1, %v1141_v6  ;;  %v2375_v6 = vld [vmem:[%s3680_s6 + $0x28] sm:$0xff] }
 0xd24   :  { %v1140_v8 = vpop.xlane.xlu1 %1139 }
 0xd25   :  { %v1142_v9 = vmul.f32 0.03125, %v1140_v8  ;;  %v1145_v10 = vmul.f32 %v1143_v7, %v1143_v7 }
 0xd27   :  { %v1144_v11 = vsub.f32 %v1132_v4, %v1142_v9  ;;  %v1147_v12 = vsel %vm186_vm3, %v1145_v10, 0.0  ;;  %v2899_v10 = vpack.c.bf16 %v2375_v6, %v2374_v5 }
 0xd28   :  { %1148 = vadd.xlane.f32.xlu0 %v1147_v12 }
 0xd29   :  { %v1146_v13 = vmul.f32 %v1144_v11, %v1144_v11 }
 0xd2b   :  { %v1150_v34 = vsel %vm186_vm3, %v1146_v13, 0.0 }
 0xd2c   :  { %1151 = vadd.xlane.f32.xlu1 %v1150_v34 }
 0xdb5   :  { %v1149_v17 = vpop.xlane.xlu0 %1148 }
 0xdb6   :  { %v1153_v18 = vmul.f32 0.03125, %v1149_v17 }
 0xdb8   :  { %v1155_v19 = vadd.f32 1e-05, %v1153_v18 }
 0xdb9   :  { %v1152_v20 = vpop.xlane.xlu1 %1151 }
 0xdba   :  { %3052 = vrsqrt.f32 %v1155_v19  ;;  %v1154_v21 = vmul.f32 0.03125, %v1152_v20 }
 0xdbc   :  { %v1156_v22 = vadd.f32 1e-05, %v1154_v21 }
 0xdbe   :  { %3054 = vrsqrt.f32 %v1156_v22 }
 0xdc4   :  { %v3053_v23 = vpop.eup %3052 }
 0xdc5   :  { %v1159_v25 = vmul.f32 %v3053_v23, %v1143_v7 }
 0xdc7   :  { %v1167_v27 = vmul.f32 %v2367_v24, %v1159_v25 }
 0xdc8   :  { %v3055_v28 = vpop.eup %3054 }
 0xdc9   :  { %v1160_v29 = vmul.f32 %v3055_v28, %v1144_v11  ;;  %v3470_v30 = vadd.f32 %v2368_v26, %v1167_v27 }
 0xdcb   :  { %v1168_v31 = vmul.f32 %v2367_v24, %v1160_v29  ;;  %2687 = vmatprep.mubr.msk.f32.mxu0 %vm186_vm3, %v3470_v30 }
 0xdcd   :  { %v3474_v35 = vadd.f32 %v2368_v26, %v1168_v31 }
 0xdcf   :  { %2688 = vmatmul.mubr.msk.f32.vlgmr.msra.gmra.mrb[8].mxu0 %vm186_vm3, %v3474_v35 }
 0xea2   :  { %v2689_v38 = vpop.f32.mrb[8].mxu0 }
 0xea3   :  { %v1273_v40 = vadd.f32 %v2689_v38, %v2378_v37  ;;  %v1267_v41 = vpop.f32.mrb[9].mxu0  ;;  %v2376_v38 = vld [vmem:[%s3680_s6 + $0x30] sm:$0xff] }
 0xea4   :  { %v1268_v42 = vadd.f32 %v2378_v37, %v1267_v41 }
 0xea6   :  { %2694 = vmatprep.mubr.msk.f32.mxu0 %vm275_vm4, %v1268_v42  ;;  %v3482_v44 = vpack.i.bf16 %v1273_v40, %v1268_v42 }
 0xea8   :  { %3005 = vrot.lane.b32.xlu1 %v3482_v44, %s3118_s22 }
 0xf1a   :  { %v3006_v47 = vpop.permute.xlu1 %3005 }
 0xf1b   :  { %v3008_v48 = vunpack.i.h.bf16 %v3006_v47  ;;  %v3007_v49 = vunpack.i.l.bf16 %v3006_v47 }
 0xf1d   :  { %v2889_v50 = vpack.c.bf16 %v3008_v48, %v3007_v49 }
 0xf1f   :  { %2891 = vmatprep.subr.msk.bf16.mxu0 %vm3292_vm5, %v2889_v50 }
 0xf20   :  { %2894 = vmatpush3.bf16.xpose.msk.msra.mxu0 %vm3292_vm5, %v2889_v50 }
 0xf27   :  { %2695 = vmatmul.mubr.msk.f32.vlgmr.msra.gmra.mrb[10].mxu0 %vm275_vm4, %v1273_v40 }
 0xffa   :  { %v2696_v51 = vpop.f32.mrb[10].mxu0 }
 0xffb   :  { %v1364_v52 = vadd.f32 %v2696_v51, %v3304_v45  ;;  %v1358_v53 = vpop.f32.mrb[11].mxu0 }
 0xffc   :  { %v1359_v39 = vadd.f32 %v1358_v53, %v3309_v46 }
 0xffd   :  { %v1370_v54 = vsel %vm275_vm4, %v1364_v52, -inf }
 0xffe   :  { %1371 = vmax.xlane.f32.xlu0 %v1370_v54  ;;  %v1367_v55 = vsel %vm275_vm4, %v1359_v39, -inf }
 0xfff   :  { %1368 = vmax.xlane.f32.xlu1 %v1367_v55 }
0x1010   :  { %3015 = vrot.lane.b32.xlu1 %v3482_v44, %s3119_s3 }
0x108b   :  { %v1372_v56 = vpop.xlane.xlu0 %1371 }
0x108c   :  { %v1374_v57 = vsub.f32 %v1364_v52, %v1372_v56  ;;  %v1369_v58 = vpop.xlane.xlu1 %1368  ;;  %v2390_v56 = vld [vmem:[%s3681_s7 + $0x1] ss:$0 sm:$0xff] }
0x108d   :  { %v1373_v59 = vsub.f32 %v1359_v39, %v1369_v58 }
0x108e   :  { %v1377_v60 = vmul.f32 1.442695, %v1374_v57 }
0x108f   :  { %v1375_v61 = vmul.f32 1.442695, %v1373_v59 }
0x1090   :  { %3056 = vpow2.f32 %v1377_v60  ;;  %v3016_v11 = vpop.permute.xlu1 %3015 }
0x1091   :  { %3058 = vpow2.f32 %v1375_v61  ;;  %v3018_v34 = vunpack.i.h.bf16 %v3016_v11  ;;  %v3017_v36 = vunpack.i.l.bf16 %v3016_v11 }
0x1093   :  { %v2903_v14 = vpack.c.bf16 %v3018_v34, %v3017_v36 }
0x109a   :  { %v3057_v62 = vpop.eup %3056 }
0x109b   :  { %v1382_v63 = vsel %vm275_vm4, %v3057_v62, 0.0  ;;  %v3059_v0 = vpop.eup %3058 }
0x109c   :  { %1383 = vadd.xlane.f32.xlu0 %v1382_v63  ;;  %v1379_v1 = vsel %vm275_vm4, %v3059_v0, 0.0 }
0x10a0   :  { %1380 = vadd.xlane.f32.xlu0 %v1379_v1 }
0x10b6   :  { %3010 = vrot.lane.b32.xlu0 %v3482_v44, %s3121_s27 }
0x10ba   :  { %1565 = vrot.lane.b32.xlu0 %v1268_v42, %s3120_s26 }
0x10be   :  { %1567 = vrot.lane.b32.xlu0 %v1273_v40, %s3120_s26  ;;  %v2377_v40 = vld [vmem:[%s3680_s6 + $0x38] sm:$0xff] }
0x10bf   :  { %v2913_v41 = vpack.c.bf16 %v2377_v40, %v2376_v38  ;;  %v2417_v40 = vld [vmem:[%s3684_s10 + $0xb0] sm:$0xff] }
0x1129   :  { %v1384_v3 = vpop.xlane.xlu0 %1383 }
0x112a   :  { %3060 = vrcp.f32 %v1384_v3 }
0x112d   :  { %v1381_v4 = vpop.xlane.xlu0 %1380 }
0x112e   :  { %3062 = vrcp.f32 %v1381_v4 }
0x1131   :  { %v3011_v2 = vpop.permute.xlu0 %3010 }
0x1132   :  { %v3013_v7 = vunpack.i.h.bf16 %v3011_v2  ;;  %v3012_v8 = vunpack.i.l.bf16 %v3011_v2 }
0x1134   :  { %v2895_v9 = vpack.c.bf16 %v3013_v7, %v3012_v8  ;;  %v3061_v12 = vpop.eup %3060 }
0x1135   :  { %v1388_v33 = vmul.f32 %v3061_v12, %v3057_v62  ;;  %v1566_v17 = vpop.permute.xlu0 %1565  ;;  %v2405_v12 = vld [vmem:[%s3682_s8 + $0x30] sm:$0xff] }
0x1136   :  { %2896 = vmatprep.subr.bf16.mxu0 %v2895_v9 }
0x1137   :  { %2898 = vmatpush3.bf16.msra.mxu0 %v2895_v9 }
0x1138   :  { %v3063_v13 = vpop.eup %3062  ;;  %2900 = vmatprep.subr.bf16.mxu0 %v2899_v10 }
0x1139   :  { %v1386_v32 = vmul.f32 %v3063_v13, %v3059_v0  ;;  %v1568_v18 = vpop.permute.xlu0 %1567  ;;  %v2406_v13 = vld [vmem:[%s3682_s8 + $0x38] sm:$0xff] }
0x113a   :  { %v2921_v34 = vpack.c.bf16 %v2406_v13, %v2405_v12 }
0x113b   :  { %2701 = vmatprep.mubr.msk.f32.mxu0 %vm275_vm4, %v1386_v32 }
0x113c   :  { %2702 = vmatmul.mubr.msk.f32.vlgmr.msra.gmra.mrb[12].mxu0 %vm275_vm4, %v1388_v33 }
0x113d   :  { %2902 = vmatpush3.bf16.msra.mxu0 %v2899_v10  ;;  %v2404_v10 = vld [vmem:[%s3682_s8 + $0x28] sm:$0xff] }
0x113e   :  { %2905 = vmatprep.subr.msk.bf16.mxu0 %vm3292_vm5, %v2903_v14 }
0x120f   :  { %v2703_v15 = vpop.f32.mrb[12].mxu0 }
0x1210   :  { %v1467_v16 = vpop.f32.mrb[13].mxu0 }
0x1211   :  { %2708 = vmatprep.mubr.msk.f32.mxu0 %vm275_vm4, %v1467_v16 }
0x1212   :  { %2709 = vmatmul.mubr.msk.f32.vlgmr.msra.gmra.mrb[14].mxu0 %vm275_vm4, %v2703_v15 }
0x1213   :  { %2908 = vmatpush3.bf16.xpose.msk.msra.mxu0 %vm3292_vm5, %v2903_v14  ;;  %2715 = vmatprep.mubr.msk.f32.mxu0 %vm275_vm4, %v1566_v17 }
0x1214   :  { %2914 = vmatprep.subr.bf16.mxu0 %v2913_v41 }
0x121a   :  { %2716 = vmatmul.mubr.msk.f32.vlgmr.msra.gmra.mrb[16].mxu0 %vm275_vm4, %v1568_v18  ;;  %v2401_v18 = vld [vmem:[%s3686_s12 + $0x1] ss:$0 sm:$0xff] }
0x121b   :  { %2916 = vmatpush3.bf16.msra.mxu0 %v2913_v41  ;;  %v2418_v41 = vld [vmem:[%s3684_s10 + $0xb8] sm:$0xff] }
0x12ed   :  { %v2717_v19 = vpop.f32.mrb[16].mxu0 }
0x12ee   :  { %v1653_v20 = vadd.f32 %v2717_v19, %v3304_v45  ;;  %v1647_v21 = vpop.f32.mrb[17].mxu0 }
0x12ef   :  { %v1648_v22 = vadd.f32 %v1647_v21, %v3309_v46 }
0x12f0   :  { %v1659_v23 = vsel %vm275_vm4, %v1653_v20, -inf }
0x12f1   :  { %1660 = vmax.xlane.f32.xlu1 %v1659_v23  ;;  %v1656_v24 = vsel %vm275_vm4, %v1648_v22, -inf }
0x12f2   :  { %1657 = vmax.xlane.f32.xlu0 %v1656_v24 }
0x137e   :  { %v1661_v25 = vpop.xlane.xlu1 %1660 }
0x137f   :  { %v1663_v43 = vsub.f32 %v1653_v20, %v1661_v25  ;;  %v1658_v26 = vpop.xlane.xlu0 %1657  ;;  %v2402_v20 = vld [vmem:[%s3687_s13 + $0x1] ss:$0 sm:$0xff] }
0x1380   :  { %v1662_v27 = vsub.f32 %v1648_v22, %v1658_v26  ;;  %v2411_v26 = vld [vmem:[%s3684_s10 + $0x80] sm:$0xff] }
0x1381   :  { %v1666_v28 = vmul.f32 1.442695, %v1663_v43 }
0x1382   :  { %v1664_v29 = vmul.f32 1.442695, %v1662_v27  ;;  %v2412_v27 = vld [vmem:[%s3684_s10 + $0x88] sm:$0xff] }
0x1383   :  { %3064 = vpow2.f32 %v1666_v28  ;;  %v2925_v28 = vpack.c.bf16 %v2412_v27, %v2411_v26 }
0x1384   :  { %3066 = vpow2.f32 %v1664_v29  ;;  %v2413_v29 = vld [vmem:[%s3684_s10 + $0x90] sm:$0xff] }
0x1385   :  { %2926 = vmatprep.subr.bf16.mxu0 %v2925_v28 }
0x138d   :  { %v3065_v31 = vpop.eup %3064 }
0x138e   :  { %v1671_v45 = vsel %vm275_vm4, %v3065_v31, 0.0  ;;  %v3067_v37 = vpop.eup %3066 }
0x138f   :  { %1672 = vadd.xlane.f32.xlu0 %v1671_v45  ;;  %v1668_v46 = vsel %vm275_vm4, %v3067_v37, 0.0 }
0x1393   :  { %1669 = vadd.xlane.f32.xlu0 %v1668_v46  ;;  %v2416_v46 = vld [vmem:[%s3684_s10 + $0xa8] sm:$0xff] }
0x13a9   :  { %3020 = vrot.lane.b32.xlu0 %v3482_v44, %s3122_s21 }
0x141c   :  { %v1673_v42 = vpop.xlane.xlu0 %1672 }
0x141d   :  { %3068 = vrcp.f32 %v1673_v42  ;;  %v2937_v42 = vpack.c.bf16 %v2418_v41, %v2417_v40 }
0x1420   :  { %v1670_v47 = vpop.xlane.xlu0 %1669 }
0x1421   :  { %3070 = vrcp.f32 %v1670_v47  ;;  %v2419_v47 = vld [vmem:[%s3684_s10 + $0xc0] sm:$0xff] }
0x1424   :  { %v3021_v48 = vpop.permute.xlu0 %3020 }
0x1425   :  { %v3023_v49 = vunpack.i.h.bf16 %v3021_v48  ;;  %v3022_v50 = vunpack.i.l.bf16 %v3021_v48  ;;  %v2420_v48 = vld [vmem:[%s3684_s10 + $0xc8] sm:$0xff] }
0x1427   :  { %v2909_v51 = vpack.c.bf16 %v3023_v49, %v3022_v50  ;;  %v3069_v44 = vpop.eup %3068  ;;  %v2941_v49 = vpack.c.bf16 %v2420_v48, %v2419_v47  ;;  %v2421_v50 = vld [vmem:[%s3684_s10 + $0xd0] sm:$0xff] }
0x1428   :  { %v1677_v39 = vmul.f32 %v3069_v44, %v3065_v31  ;;  %v2414_v31 = vld [vmem:[%s3684_s10 + $0x98] sm:$0xff] }
0x1429   :  { %2910 = vmatprep.subr.bf16.mxu1 %v2909_v51  ;;  %v2929_v45 = vpack.c.bf16 %v2414_v31, %v2413_v29 }
0x142a   :  { %2912 = vmatpush3.bf16.msra.mxu1 %v2909_v51  ;;  %v2422_v51 = vld [vmem:[%s3684_s10 + $0xd8] sm:$0xff] }
0x142b   :  { %v3071_v52 = vpop.eup %3070  ;;  %v2945_v44 = vpack.c.bf16 %v2422_v51, %v2421_v50 }
0x142c   :  { %v1675_v53 = vmul.f32 %v3071_v52, %v3067_v37  ;;  %v2415_v37 = vld [vmem:[%s3684_s10 + $0xa0] sm:$0xff] }
0x142d   :  { %v2933_v38 = vpack.c.bf16 %v2416_v46, %v2415_v37  ;;  %v2423_v52 = vld [vmem:[%s3684_s10 + $0xe0] sm:$0xff] }
0x142e   :  { %2722 = vmatprep.mubr.msk.f32.mxu1 %vm275_vm4, %v1675_v53  ;;  %v2424_v53 = vld [vmem:[%s3684_s10 + $0xe8] sm:$0xff] }
0x142f   :  { %2723 = vmatmul.mubr.msk.f32.vlgmr.msra.gmra.mrb[12].mxu1 %vm275_vm4, %v1677_v39  ;;  %v2949_v39 = vpack.c.bf16 %v2424_v53, %v2423_v52 }
0x1502   :  { %v2724_v54 = vpop.f32.mrb[12].mxu1 }
0x1503   :  { %v1756_v55 = vpop.f32.mrb[13].mxu1 }
0x1504   :  { %2729 = vmatprep.mubr.msk.f32.mxu0 %vm275_vm4, %v1756_v55  ;;  %v2426_v55 = vld [vmem:[%s3684_s10 + $0xf8] sm:$0xff] }
0x1505   :  { %2730 = vmatmul.mubr.msk.f32.vlgmr.msra.gmra.mrb[14].mxu0 %vm275_vm4, %v2724_v54  ;;  %v2425_v54 = vld [vmem:[%s3684_s10 + $0xf0] sm:$0xff] }
0x1506   :  { %2928 = vmatpush3.bf16.msra.mxu0 %v2925_v28 }
0x1507   :  { %2930 = vmatprep.subr.bf16.mxu0 %v2929_v45 }
0x150a   :  { %2932 = vmatpush3.bf16.msra.mxu0 %v2929_v45 }
0x150b   :  { %2934 = vmatprep.subr.bf16.mxu0 %v2933_v38 }
0x150e   :  { %2936 = vmatpush3.bf16.msra.mxu0 %v2933_v38 }
0x150f   :  { %2938 = vmatprep.subr.bf16.mxu0 %v2937_v42 }
0x1512   :  { %2940 = vmatpush3.bf16.msra.mxu0 %v2937_v42 }
0x1513   :  { %2942 = vmatprep.subr.bf16.mxu0 %v2941_v49 }
0x1516   :  { %2944 = vmatpush3.bf16.msra.mxu0 %v2941_v49 }
0x1517   :  { %2946 = vmatprep.subr.bf16.mxu0 %v2945_v44 }
0x151a   :  { %2948 = vmatpush3.bf16.msra.mxu0 %v2945_v44  ;;  %v2428_v44 = vld [vmem:[%s3685_s11 + $0x1] ss:$0 sm:$0xff] }
0x151b   :  { %2950 = vmatprep.subr.bf16.mxu0 %v2949_v39 }
0x151e   :  { %2952 = vmatpush3.bf16.msra.mxu0 %v2949_v39 }
0x15d8   :  { %v2731_v57 = vpop.f32.mrb[14].mxu0 }
0x15d9   :  { %v1837_v58 = vpop.f32.mrb[15].mxu0  ;;  %v2969_v59 = vadd.f32 %v2731_v57, %v2390_v56  ;;  %v2408_v57 = vld [vmem:[%s3683_s9 + $0x1] ss:$0 sm:$0xff] }
0x15da   :  { %v2970_v60 = vadd.f32 %v2390_v56, %v1837_v58  ;;  %v2953_v56 = vpack.c.bf16 %v2426_v55, %v2425_v54 }
0x15db   :  { %v1849_v63 = vadd.f32 %v2969_v59, %v3474_v35  ;;  %v2403_v35 = vld [vmem:[%s3682_s8 + $0x20] sm:$0xff] }
0x15dc   :  { %v1848_v61 = vadd.f32 %v2970_v60, %v3470_v30  ;;  %v2917_v11 = vpack.c.bf16 %v2404_v10, %v2403_v35  ;;  %2954 = vmatprep.subr.bf16.mxu0 %v2953_v56 }
0x15dd   :  { %v1857_v0 = vsel %vm186_vm3, %v1849_v63, 0.0  ;;  %2956 = vmatpush3.bf16.msra.mxu0 %v2953_v56 }
0x15de   :  { %v1854_v62 = vsel %vm186_vm3, %v1848_v61, 0.0  ;;  %2918 = vmatprep.subr.bf16.mxu1 %v2917_v11 }
0x15df   :  { %1855 = vadd.xlane.f32.xlu1 %v1854_v62  ;;  %2920 = vmatpush3.bf16.msra.mxu1 %v2917_v11 }
0x15e0   :  { %2922 = vmatprep.subr.bf16.mxu1 %v2921_v34 }
0x15e3   :  { %1858 = vadd.xlane.f32.xlu1 %v1857_v0  ;;  %2924 = vmatpush3.bf16.msra.mxu1 %v2921_v34 }
0x166c   :  { %v1856_v1 = vpop.xlane.xlu1 %1855 }
0x166d   :  { %v1860_v3 = vmul.f32 0.03125, %v1856_v1 }
0x166f   :  { %v1862_v4 = vsub.f32 %v1848_v61, %v1860_v3 }
0x1670   :  { %v1859_v2 = vpop.xlane.xlu1 %1858 }
0x1671   :  { %v1861_v5 = vmul.f32 0.03125, %v1859_v2  ;;  %v1864_v6 = vmul.f32 %v1862_v4, %v1862_v4 }
0x1673   :  { %v1863_v7 = vsub.f32 %v1849_v63, %v1861_v5  ;;  %v1866_v8 = vsel %vm186_vm3, %v1864_v6, 0.0 }
0x1674   :  { %1867 = vadd.xlane.f32.xlu1 %v1866_v8 }
0x1675   :  { %v1865_v9 = vmul.f32 %v1863_v7, %v1863_v7 }
0x1677   :  { %v1869_v30 = vsel %vm186_vm3, %v1865_v9, 0.0 }
0x1678   :  { %1870 = vadd.xlane.f32.xlu1 %v1869_v30 }
0x1701   :  { %v1868_v36 = vpop.xlane.xlu1 %1867 }
0x1702   :  { %v1872_v32 = vmul.f32 0.03125, %v1868_v36 }
0x1704   :  { %v1874_v33 = vadd.f32 1e-05, %v1872_v32 }
0x1705   :  { %v1871_v14 = vpop.xlane.xlu1 %1870 }
0x1706   :  { %3072 = vrsqrt.f32 %v1874_v33  ;;  %v1873_v15 = vmul.f32 0.03125, %v1871_v14 }
0x1708   :  { %v1875_v16 = vadd.f32 1e-05, %v1873_v15 }
0x170a   :  { %3074 = vrsqrt.f32 %v1875_v16 }
0x1710   :  { %v3073_v17 = vpop.eup %3072 }
0x1711   :  { %v1878_v19 = vmul.f32 %v3073_v17, %v1862_v4 }
0x1713   :  { %v1886_v21 = vmul.f32 %v2401_v18, %v1878_v19 }
0x1714   :  { %v3075_v22 = vpop.eup %3074 }
0x1715   :  { %v1879_v23 = vmul.f32 %v3075_v22, %v1863_v7  ;;  %v3564_v24 = vadd.f32 %v2402_v20, %v1886_v21 }
0x1717   :  { %v1887_v25 = vmul.f32 %v2401_v18, %v1879_v23  ;;  %2740 = vmatprep.mubr.msk.f32.mxu1 %vm186_vm3, %v3564_v24 }
0x1719   :  { %v3568_v43 = vadd.f32 %v2402_v20, %v1887_v25 }
0x171b   :  { %2741 = vmatmul.mubr.msk.f32.vlgmr.msra.gmra.mrb[14].mxu1 %vm186_vm3, %v3568_v43 }
0x17ee   :  { %v2742_v58 = vpop.f32.mrb[14].mxu1 }
0x17ef   :  { %v1987_v59 = vadd.f32 %v2742_v58, %v2408_v57  ;;  %v1981_v60 = vpop.f32.mrb[15].mxu1 }
0x17f0   :  { %v1982_v61 = vadd.f32 %v2408_v57, %v1981_v60 }
0x17f1   :  { %v1993_v62 = vmul.f32 0.70710677, %v1987_v59  ;;  %v1991_v49 = vmul.f32 0.5, %v1987_v59 }
0x17f2   :  { %v1992_v63 = vmul.f32 0.70710677, %v1982_v61  ;;  %v1990_v47 = vmul.f32 0.5, %v1982_v61 }
0x17f3   :  { %v1995_v0 = vand.u32 2147483647, %v1993_v62  ;;  %vm2035_vm8 = vcmp.lt.f32.partialorder %v1993_v62, 0.0 }
0x17f4   :  { %v1994_v1 = vand.u32 2147483647, %v1992_v63  ;;  %vm2034_vm9 = vcmp.lt.f32.partialorder %v1992_v63, 0.0 }
0x17f5   :  { %v1997_v3 = vmul.f32 0.3275911, %v1995_v0  ;;  %v2023_v6 = vsub.f32 0.0, %v1995_v0 }
0x17f6   :  { %v1996_v4 = vmul.f32 0.3275911, %v1994_v1  ;;  %v2022_v7 = vsub.f32 0.0, %v1994_v1 }
0x17f7   :  { %v1999_v2 = vadd.f32 1.0, %v1997_v3  ;;  %v2025_v9 = vmul.f32 %v2023_v6, %v1995_v0 }
0x17f8   :  { %v1998_v5 = vadd.f32 1.0, %v1996_v4  ;;  %v2024_v10 = vmul.f32 %v2022_v7, %v1994_v1 }
0x17f9   :  { %3076 = vrcp.f32 %v1999_v2  ;;  %v2028_v13 = vmul.f32 1.442695, %v2025_v9 }
0x17fa   :  { %3078 = vrcp.f32 %v1998_v5  ;;  %v2026_v32 = vmul.f32 1.442695, %v2024_v10  ;;  %v2432_v10 = vld [vmem:[%s3689_s15 + $0x1] ss:$0 sm:$0xff] }
0x17fb   :  { %3080 = vpow2.f32 %v2028_v13 }
0x17fc   :  { %3082 = vpow2.f32 %v2026_v32 }
0x1803   :  { %v3077_v8 = vpop.eup %3076 }
0x1804   :  { %v3079_v30 = vpop.eup %3078  ;;  %v2005_v35 = vmul.f32 1.0614054, %v3077_v8 }
0x1805   :  { %v2004_v11 = vmul.f32 1.0614054, %v3079_v30  ;;  %v3081_v26 = vpop.eup %3080 }
0x1806   :  { %v2007_v12 = vadd.f32 -1.4531521, %v2005_v35  ;;  %v3083_v28 = vpop.eup %3082 }
0x1807   :  { %v2006_v34 = vadd.f32 -1.4531521, %v2004_v11 }
0x1808   :  { %v2009_v36 = vmul.f32 %v3077_v8, %v2007_v12 }
0x1809   :  { %v2008_v33 = vmul.f32 %v3079_v30, %v2006_v34 }
0x180a   :  { %v2011_v14 = vadd.f32 1.4214138, %v2009_v36 }
0x180b   :  { %v2010_v15 = vadd.f32 1.4214138, %v2008_v33 }
0x180c   :  { %v2013_v16 = vmul.f32 %v3077_v8, %v2011_v14 }
0x180d   :  { %v2012_v17 = vmul.f32 %v3079_v30, %v2010_v15 }
0x180e   :  { %v2015_v18 = vadd.f32 -0.28449672, %v2013_v16 }
0x180f   :  { %v2014_v19 = vadd.f32 -0.28449672, %v2012_v17 }
0x1810   :  { %v2017_v20 = vmul.f32 %v3077_v8, %v2015_v18 }
0x1811   :  { %v2016_v21 = vmul.f32 %v3079_v30, %v2014_v19 }
0x1812   :  { %v2019_v22 = vadd.f32 0.2548296, %v2017_v20 }
0x1813   :  { %v2018_v23 = vadd.f32 0.2548296, %v2016_v21 }
0x1814   :  { %v2021_v25 = vmul.f32 %v3077_v8, %v2019_v22 }
0x1815   :  { %v2020_v27 = vmul.f32 %v3079_v30, %v2018_v23  ;;  %v2431_v30 = vld [vmem:[%s3710_s0 + $0x1] ss:$0 sm:$0xff] }
0x1816   :  { %v2031_v29 = vmul.f32 %v3081_v26, %v2021_v25  ;;  %v2236_v26 = vld [vmem:[%s3692_s18] sm:$0xff] }
0x1817   :  { %v2030_v31 = vmul.f32 %v3083_v28, %v2020_v27  ;;  %v2237_v27 = vld [vmem:[%s3692_s18 + $0x8] sm:$0xff] }
0x1818   :  { %v2033_v45 = vsub.f32 1.0, %v2031_v29  ;;  %v2957_v28 = vpack.c.bf16 %v2237_v27, %v2236_v26  ;;  %v2238_v29 = vld [vmem:[%s3692_s18 + $0x10] sm:$0xff] }
0x1819   :  { %v2032_v37 = vsub.f32 1.0, %v2030_v31  ;;  %v2239_v31 = vld [vmem:[%s3692_s18 + $0x18] sm:$0xff]  ;;  %s3123_s18 = smov [#allocation2]  }
0x181a   :  { %v2037_v46 = vsub.f32 0.0, %v2033_v45  ;;  %2958 = vmatprep.subr.bf16.mxu1 %v2957_v28  ;;  %s2328_s13 = sshll.u32 %s3123_s18, 4  ;;  %s2329_s13 = int_to_ptr.vmem [resolvable:$true] %s2328_s13 }
0x181b   :  { %v2036_v38 = vsub.f32 0.0, %v2032_v37  ;;  %2960 = vmatpush3.bf16.msra.mxu1 %v2957_v28  ;;  %p3097_p1 = scmp.lt.s32.totalorder %s2329_s13, %s2329_s13 }
0x181c   :  { %v2039_v40 = vsel %vm2035_vm8, %v2037_v46, %v2033_v45  ;;  %v2961_v45 = vpack.c.bf16 %v2239_v31, %v2238_v29 }
0x181d   :  { %v2041_v41 = vadd.f32 1.0, %v2039_v40  ;;  %v2038_v42 = vsel %vm2034_vm9, %v2036_v38, %v2032_v37 }
0x181e   :  { %v2040_v48 = vadd.f32 1.0, %v2038_v42  ;;  %2962 = vmatprep.subr.bf16.mxu1 %v2961_v45 }
0x181f   :  { %v2043_v51 = vmul.f32 %v2041_v41, %v1991_v49  ;;  %2964 = vmatpush3.bf16.msra.mxu1 %v2961_v45 }
0x1820   :  { %v2042_v50 = vmul.f32 %v2040_v48, %v1990_v47  ;;  %v2433_v48 = vld [vmem:[%s3690_s16] ss:$0 sm:$0xff]  ;;  %s3092_s16 = scalar_lea.vmem %s2329_s13, 256 }
0x1821   :  { %p3093_p0 = scmp.ne.s32.totalorder %s2329_s13, %s3092_s16  ;;  %p3098_p2 = scmp.lt.s32.totalorder %s3092_s16, %s3092_s16 }
0x1822   :  { %2775 = vmatprep.mubr.f32.mxu0 %v2042_v50  ;;  %v2434_v50 = vld [vmem:[%s3691_s17] ss:$0 sm:$0xff] }
0x1823   :  { %2776 = vmatmul.mubr.f32.vlgmr.msra.gmra.mrb[18].mxu0 %v2043_v51  ;;  %p3099_p3 = por %p3098_p2, %p3097_p1 }
0x1825   :  { %p3100_p4 = pnand %p3099_p3, %p3093_p0 }
0x18f6   :  { %v2777_v52 = vpop.f32.mrb[18].mxu0 }
0x18f7   :  { %v2135_v53 = vpop.f32.mrb[19].mxu0  ;;  %v2141_v39 = vadd.f32 %v2777_v52, %v2428_v44 }
0x18f8   :  { %v2136_v54 = vadd.f32 %v2428_v44, %v2135_v53 }
0x18f9   :  { %v2145_v57 = vadd.f32 %v2141_v39, %v3568_v43 }
0x18fa   :  { %v2144_v55 = vadd.f32 %v2136_v54, %v3564_v24 }
0x18fb   :  { %v2153_v58 = vsel %vm186_vm3, %v2145_v57, 0.0 }
0x18fc   :  { %v2150_v56 = vsel %vm186_vm3, %v2144_v55, 0.0 }
0x18fd   :  { %2151 = vadd.xlane.f32.xlu1 %v2150_v56 }
0x1901   :  { %2154 = vadd.xlane.f32.xlu1 %v2153_v58 }
0x198a   :  { %v2152_v59 = vpop.xlane.xlu1 %2151 }
0x198b   :  { %v2156_v60 = vmul.f32 0.03125, %v2152_v59 }
0x198d   :  { %v2158_v61 = vsub.f32 %v2144_v55, %v2156_v60 }
0x198e   :  { %v2155_v62 = vpop.xlane.xlu1 %2154 }
0x198f   :  { %v2157_v63 = vmul.f32 0.03125, %v2155_v62  ;;  %v2160_v0 = vmul.f32 %v2158_v61, %v2158_v61 }
0x1991   :  { %v2159_v1 = vsub.f32 %v2145_v57, %v2157_v63  ;;  %v2162_v3 = vsel %vm186_vm3, %v2160_v0, 0.0 }
0x1992   :  { %2163 = vadd.xlane.f32.xlu0 %v2162_v3 }
0x1993   :  { %v2161_v4 = vmul.f32 %v2159_v1, %v2159_v1 }
0x1995   :  { %v2165_v24 = vsel %vm186_vm3, %v2161_v4, 0.0 }
0x1996   :  { %2166 = vadd.xlane.f32.xlu1 %v2165_v24 }
0x1a1f   :  { %v2164_v2 = vpop.xlane.xlu0 %2163 }
0x1a20   :  { %v2168_v43 = vmul.f32 0.03125, %v2164_v2 }
0x1a22   :  { %v2170_v5 = vadd.f32 1e-05, %v2168_v43 }
0x1a23   :  { %v2167_v6 = vpop.xlane.xlu1 %2166 }
0x1a24   :  { %3084 = vrsqrt.f32 %v2170_v5  ;;  %v2169_v7 = vmul.f32 0.03125, %v2167_v6 }
0x1a26   :  { %v2171_v8 = vadd.f32 1e-05, %v2169_v7 }
0x1a28   :  { %3086 = vrsqrt.f32 %v2171_v8 }
0x1a2e   :  { %v3085_v9 = vpop.eup %3084 }
0x1a2f   :  { %v2174_v35 = vmul.f32 %v3085_v9, %v2158_v61 }
0x1a31   :  { %v2182_v11 = vmul.f32 %v2431_v30, %v2174_v35 }
0x1a32   :  { %v3087_v12 = vpop.eup %3086 }
0x1a33   :  { %v2190_v13 = vadd.f32 %v2432_v10, %v2182_v11  ;;  %v2175_v34 = vmul.f32 %v3087_v12, %v2159_v1 }
0x1a35   :  { %v2194_v36 = vsel %vm186_vm3, %v2190_v13, 0.0  ;;  %v2183_v32 = vmul.f32 %v2431_v30, %v2175_v34 }
0x1a36   :  { %2195 = vadd.xlane.f32.xlu1 %v2194_v36 }
0x1a37   :  { %v2191_v33 = vadd.f32 %v2432_v10, %v2183_v32 }
0x1a39   :  { %v2197_v14 = vsel %vm186_vm3, %v2191_v33, 0.0 }
0x1a3a   :  { %2198 = vadd.xlane.f32.xlu1 %v2197_v14 }
0x1ac3   :  { %v2196_v15 = vpop.xlane.xlu1 %2195 }
0x1ac4   :  { %v2200_v16 = vmul.f32 0.03125, %v2196_v15 }
0x1ac6   :  { %v2202_v17 = vsub.f32 %v2190_v13, %v2200_v16 }
0x1ac7   :  { %v2199_v18 = vpop.xlane.xlu1 %2198 }
0x1ac8   :  { %v2201_v19 = vmul.f32 0.03125, %v2199_v18  ;;  %v2204_v20 = vmul.f32 %v2202_v17, %v2202_v17 }
0x1aca   :  { %v2203_v21 = vsub.f32 %v2191_v33, %v2201_v19  ;;  %v2206_v22 = vsel %vm186_vm3, %v2204_v20, 0.0 }
0x1acb   :  { %2207 = vadd.xlane.f32.xlu1 %v2206_v22 }
0x1acc   :  { %v2205_v23 = vmul.f32 %v2203_v21, %v2203_v21 }
0x1ace   :  { %v2209_v25 = vsel %vm186_vm3, %v2205_v23, 0.0 }
0x1acf   :  { %2210 = vadd.xlane.f32.xlu1 %v2209_v25 }
0x1b58   :  { %v2208_v37 = vpop.xlane.xlu1 %2207 }
0x1b59   :  { %v2212_v46 = vmul.f32 0.03125, %v2208_v37 }
0x1b5b   :  { %v2214_v38 = vadd.f32 1e-05, %v2212_v46 }
0x1b5c   :  { %v2211_v40 = vpop.xlane.xlu1 %2210 }
0x1b5d   :  { %3088 = vrsqrt.f32 %v2214_v38  ;;  %v2213_v41 = vmul.f32 0.03125, %v2211_v40 }
0x1b5f   :  { %v2215_v42 = vadd.f32 1e-05, %v2213_v41 }
0x1b61   :  { %3090 = vrsqrt.f32 %v2215_v42 }
0x1b67   :  { %v3089_v47 = vpop.eup %3088 }
0x1b68   :  { %v2218_v49 = vmul.f32 %v3089_v47, %v2202_v17 }
0x1b6a   :  { %v2226_v51 = vmul.f32 %v2433_v48, %v2218_v49 }
0x1b6b   :  { %v3091_v44 = vpop.eup %3090 }
0x1b6c   :  { %v2219_v52 = vmul.f32 %v3091_v44, %v2203_v21  ;;  %v2234_v53 = vadd.f32 %v2434_v50, %v2226_v51 }
0x1b6e   :  { %v2227_v39 = vmul.f32 %v2433_v48, %v2219_v52  ;;  %2786 = vmatprep.mubr.msk.f32.mxu1 %vm186_vm3, %v2234_v53 }
0x1b70   :  { %v2235_v54 = vadd.f32 %v2434_v50, %v2227_v39 }
0x1b72   :  { %2787 = vmatmul.mubr.msk.f32.vlgmr.msra.gmra.mrb[16].mxu1 %vm186_vm3, %v2235_v54 }
0x1c45   :  { %v2788_v55 = vpop.f32.mrb[16].mxu1 }
0x1c46   :  { %2322 = vst [vmem:[#allocation2 + $0x8] sm:$0xff] %v2788_v55  ;;  %v2312_v56 = vpop.f32.mrb[17].mxu1 }
0x1c47   :  { %2321 = vst [vmem:[#allocation2] sm:$0xff] %v2312_v56 }
0x1c48   :  { %3103 = shalt.err (!%p3100_p4)
}
0x1c49   :  { %s3104_s27 = scalar_lea.hbm %s3693_s19, 256 }
0x1c4a   :  { %p3105_p5 = scmp.ne.s32.totalorder %s3693_s19, %s3104_s27  ;;  %p3108_p6 = scmp.lt.u32.totalorder %s3104_s27, %s3693_s19 }
0x1c4c   :  { %p3110_p7 = pnand %p3108_p6, %p3105_p5 }
0x1c4e   :  { %3113 = shalt.err (!%p3110_p7)
}
0x1c4f   :  { %s3124_s7 = smov 128   ;;  %s3125_s25 = smov 8  }
0x1c50   :  { %2334 = dma.vmem_to_hbm [thread:$0]  %s2329_s13, 256, %s3693_s19, [#allocation3], %s3124_s7, %s3124_s7, %s3125_s25  }
0x1c51   :  { %3114 = dma.done.wait [#allocation3], 256  }
0x1c52   :  { %3115 = vsyncadd [#allocation3], 4294967040 }
0x1c53   :  { %2338 = vsyncpa [#allocation3], 1 }

</bundles_post_ra>
